<compile_context>
chip_gen: v7x
topology: tpu7x:2x2x1
jax: 0.10.0
libtpu: 0.0.40
codegen_flags: <defaults>
</compile_context>

<pallas_src>
import jax
import jax.numpy as jnp
from jax.experimental import pallas as pl
from jax.experimental.pallas import tpu as pltpu

# ---- model dimensions (small, consistent with the forward pass) ----
B, N, D, M = 2, 8, 32, 32            # batch, nodes, node hidden dim, edge hidden dim
DRUG_VOCAB, DRUG_EMB, DRUG_HID = 16, 16, 32
HEAD_DIM = D + DRUG_HID              # == `dim` of nn.Linear(dim, 1)
assert D == M == DRUG_HID            # lets every block of the packed slab be 32 lanes wide

LANES = 32                           # lane width of the packed parameter slab
OUT_ROWS = 8                         # full (8,128) output tile; wrapper slices [:B, :1]

# ---- packed parameter-slab row offsets (every block starts on a multiple of 8) ----
W1A_OFF   = 0                        # (D, M)   h_i projection of the edge MLP
W1B_OFF   = W1A_OFF + D              # (D, M)   h_j projection of the edge MLP
W2_OFF    = W1B_OFF + D              # (M, M)   edge MLP layer 2
W3A_OFF   = W2_OFF + M               # (D, D)   node MLP, acts on h
W3B_OFF   = W3A_OFF + D              # (M, D)   node MLP, acts on agg
W4_OFF    = W3B_OFF + M              # (D, D)   node MLP layer 2
WDRUG_OFF = W4_OFF + D               # (32, 32) drug MLP (input dim zero-padded 16 -> 32)
DT_OFF    = WDRUG_OFF + 32           # (16, 32) drug embedding table (lanes >=16 zero)
BIAS_OFF  = DT_OFF + DRUG_VOCAB      # (16, 32) bias / head rows
SLAB_ROWS = BIAS_OFF + 16            # 256


# --------------------------------------------------------------------------
# Single fused kernel: EGNN layer + masked mean pooling + drug MLP + head
# --------------------------------------------------------------------------
def fused_egnn_pli_kernel(drugs_ref, feats_ref, coors_ref, mask_ref, slab_ref, out_ref):
    h = feats_ref[...].reshape(B * N, D)                    # fold batch into rows
    x3 = coors_ref[...]                                     # (B, N, 3)
    m3 = mask_ref[...]                                      # (B, N, 1)

    # --- carve the packed parameter slab with static, sublane-aligned slices ---
    w1a   = slab_ref[W1A_OFF:W1A_OFF + D, :]                # (D, M)
    w1b   = slab_ref[W1B_OFF:W1B_OFF + D, :]                # (D, M)
    w2    = slab_ref[W2_OFF:W2_OFF + M, :]                  # (M, M)
    w3a   = slab_ref[W3A_OFF:W3A_OFF + D, :]                # (D, D)
    w3b   = slab_ref[W3B_OFF:W3B_OFF + M, :]                # (M, D)
    w4    = slab_ref[W4_OFF:W4_OFF + D, :]                  # (D, D)
    wdrug = slab_ref[WDRUG_OFF:WDRUG_OFF + 32, :]           # (32, DRUG_HID), rows >=16 zero
    bias  = slab_ref[BIAS_OFF:BIAS_OFF + 16, :]             # (16, 32) packed rows
    wd, b1, b2    = bias[0:1, :], bias[1:2, :], bias[2:3, :]
    b3, b4, bdrg  = bias[3:4, :], bias[4:5, :], bias[5:6, :]
    wlp, wld, blv = bias[6:7, :], bias[7:8, :], bias[8:9, :]   # head rows, blv = [bl,0,...]

    # --- pairwise squared distances, per coordinate (pure VPU, no size-3 lane reduce) ---
    x_i = x3[:, :, None, :]                                 # (B, N, 1, 3)
    x_j = x3[:, None, :, :]                                 # (B, 1, N, 3)
    d0 = x_i[..., 0:1] - x_j[..., 0:1]
    d1 = x_i[..., 1:2] - x_j[..., 1:2]
    d2 = x_i[..., 2:3] - x_j[..., 2:3]
    dist = d0 * d0 + d1 * d1 + d2 * d2                      # (B, N, N, 1)

    # --- edge MLP layer 1: two matmuls (no lane-offset slice of a fused output) ---
    hs = jnp.dot(h, w1a, preferred_element_type=jnp.float32)   # (B*N, M)
    ht = jnp.dot(h, w1b, preferred_element_type=jnp.float32)   # (B*N, M)
    e1 = jax.nn.silu(hs.reshape(B, N, 1, M) + ht.reshape(B, 1, N, M)
                     + dist * wd + b1)                      # (B, N, N, M)

    # --- edge MLP layer 2 (flatten exactly once, right before the matmul) ---
    e2 = jax.nn.silu(
        jnp.dot(e1.reshape(B * N * N, M), w2,
                preferred_element_type=jnp.float32) + b2)   # (B*N*N, M)

    # --- masked message aggregation over neighbours j, per batch segment ---
    mask_j = m3.reshape(B, 1, N, 1)
    agg = jnp.sum(e2.reshape(B, N, N, M) * mask_j, axis=2).reshape(B * N, M)

    # --- node MLP with split W3 (no lane-axis concat) + residual ---
    n1 = jax.nn.silu(jnp.dot(h, w3a, preferred_element_type=jnp.float32)
                     + jnp.dot(agg, w3b, preferred_element_type=jnp.float32) + b3)
    h_new = h + jnp.dot(n1, w4, preferred_element_type=jnp.float32) + b4

    # --- masked mean pooling (denominator clamp guards all-masked rows; ref would NaN) ---
    summed = jnp.sum((h_new * m3.reshape(B * N, 1)).reshape(B, N, D), axis=1)  # (B, D)
    denom = jnp.maximum(jnp.sum(m3, axis=1), 1.0)                              # (B, 1)
    pooled = summed * pl.reciprocal(denom, approx=True)                        # (B, D)

    # --- drug branch: in-kernel embedding gather (SMEM ids -> dynamic slab rows) + MLP ---
    emb_rows = [slab_ref[pl.ds(DT_OFF + drugs_ref[b], 1), :] for b in range(B)]
    drug_emb = jnp.concatenate(emb_rows, axis=0)            # (B, 32); lanes >= DRUG_EMB zero
    drug_h = jax.nn.relu(jnp.dot(drug_emb, wdrug,
                                 preferred_element_type=jnp.float32) + bdrg)   # (B, DRUG_HID)

    # --- head nn.Linear(D + DRUG_HID, 1) on the VPU (no width-1 matmuls) ---
    z = pooled * wlp + drug_h * wld + blv                   # (B, 32)
    pred = jnp.sum(z, axis=-1, keepdims=True)               # (B, 1)

    # --- full, unmasked (8, 128) output tile; wrapper slices [:B, :1] ---
    if OUT_ROWS > B:
        pred = jnp.concatenate(
            [pred, jnp.zeros((OUT_ROWS - B, 1), jnp.float32)], axis=0)
    out_ref[...] = jnp.broadcast_to(pred, (OUT_ROWS, 128))


# --------------------------------------------------------------------------
# Parameter packing (runs once at parameter-prep time, NOT per forward call)
# --------------------------------------------------------------------------
def pack_param_slab(p):
    """Pack every weight / bias / the drug table into one (SLAB_ROWS, 32) f32 slab."""
    def blk(x, rows, lanes=LANES):
        out = jnp.zeros((rows, lanes), jnp.float32)
        return out.at[:x.shape[0], :x.shape[1]].set(x)

    wl = p['wl']                                            # (HEAD_DIM, 1)
    bias = jnp.zeros((16, LANES), jnp.float32)
    bias = bias.at[0, :].set(p['wd'][0])
    bias = bias.at[1, :].set(p['b1'][0])
    bias = bias.at[2, :].set(p['b2'][0])
    bias = bias.at[3, :].set(p['b3'][0])
    bias = bias.at[4, :].set(p['b4'][0])
    bias = bias.at[5, :].set(p['bdrug'][0])
    bias = bias.at[6, :].set(wl[:D, 0])                     # head weights for pooled protein
    bias = bias.at[7, :].set(wl[D:, 0])                     # head weights for drug embedding
    bias = bias.at[8, 0].set(p['bl'][0, 0])                 # head bias in lane 0

    slab = jnp.concatenate([
        blk(p['w1'][:, :M], D),                             # w1a
        blk(p['w1'][:, M:], D),                             # w1b
        blk(p['w2'], M),
        blk(p['w3'][:D, :], D),                             # w3a (acts on h)
        blk(p['w3'][D:, :], M),                             # w3b (acts on agg)
        blk(p['w4'], D),
        blk(p['wdrug'], 32),                                # zero-pad input dim 16 -> 32
        blk(p['drug_table'], DRUG_VOCAB),                   # (16,16) -> (16,32)
        bias,
    ], axis=0)
    assert slab.shape == (SLAB_ROWS, LANES)
    return slab


# --------------------------------------------------------------------------
# Wrapper: one pallas_call, single invocation (no grid); 5 operands total
# --------------------------------------------------------------------------
@jax.jit
def egnn_pli_forward(feats, coors, mask, drugs, slab):
    # TODO(synk): the PyTorch model loads drug graphs from SDF files and runs a
    # graph NN (Batch.from_data_list + drug_model); replaced here by a
    # deterministic embedding-table lookup + MLP living inside the kernel.
    vmem = pl.BlockSpec(memory_space=pltpu.MemorySpace.VMEM)
    out = pl.pallas_call(
        fused_egnn_pli_kernel,
        out_shape=jax.ShapeDtypeStruct((OUT_ROWS, 128), jnp.float32),
        in_specs=[pl.BlockSpec(memory_space=pltpu.MemorySpace.SMEM),   # drug ids (B,) int32
                  vmem,                                                # feats
                  vmem,                                                # coors
                  vmem,                                                # mask
                  vmem],                                               # packed param slab
        out_specs=vmem,
    )(drugs, feats, coors, mask, slab)
    return out[:B, :1]                                      # (B, 1)


# --------------------------------------------------------------------------
# Pure-JAX reference (numerical sanity check; same weight layout as kernel)
# --------------------------------------------------------------------------
def ref_model(feats, coors, mask, drug_emb, p):
    rel = coors[:, :, None, :] - coors[:, None, :, :]
    dist = jnp.sum(rel * rel, axis=-1, keepdims=True)       # (B,N,N,1)
    hh = feats @ p['w1']                                    # (B,N,2M)
    hs, ht = hh[..., :M], hh[..., M:]
    e1 = jax.nn.silu(hs[:, :, None, :] + ht[:, None, :, :] + dist * p['wd'] + p['b1'])
    e2 = jax.nn.silu(e1 @ p['w2'] + p['b2'])                # (B,N,N,M)
    agg = jnp.sum(e2 * mask[:, None, :, :], axis=2)         # (B,N,M)
    n1 = jax.nn.silu(jnp.concatenate([feats, agg], axis=-1) @ p['w3'] + p['b3'])
    h_new = feats + n1 @ p['w4'] + p['b4']
    pooled = jnp.sum(h_new * mask, axis=1) / jnp.sum(mask, axis=1)      # (B,D)
    drug_h = jax.nn.relu(drug_emb @ p['wdrug'] + p['bdrug'])
    return jnp.concatenate([pooled, drug_h], axis=1) @ p['wl'] + p['bl']


# --------------------------------------------------------------------------
# Deterministic parameter init (weights in [in, out] layout)
# --------------------------------------------------------------------------
def init_params(key):
    ks = jax.random.split(key, 16)

    def lin_t(k, in_dim, out_dim):
        return (jax.random.normal(k, (in_dim, out_dim), jnp.float32)
                / jnp.sqrt(jnp.float32(in_dim)))

    def bias(k, n):
        return jax.random.normal(k, (1, n), jnp.float32) * 0.1

    p = {}
    # edge MLP: Linear(2D+1 -> M) split into [h_i | h_j | dist], Linear(M -> M)
    p['w1'] = lin_t(ks[0], D, 2 * M)                        # [W1a^T | W1b^T]
    p['wd'] = jax.random.normal(ks[1], (1, M), jnp.float32) * 0.1
    p['b1'] = bias(ks[2], M)
    p['w2'] = lin_t(ks[3], M, M)
    p['b2'] = bias(ks[4], M)
    # node MLP: Linear(D+M -> D) acting on concat(h, agg), Linear(D -> D)
    p['w3'] = lin_t(ks[5], D + M, D)
    p['b3'] = bias(ks[6], D)
    p['w4'] = lin_t(ks[7], D, D)
    p['b4'] = bias(ks[8], D)
    # drug "model": embedding table + Linear(DRUG_EMB -> DRUG_HID)
    p['drug_table'] = jax.random.normal(ks[9], (DRUG_VOCAB, DRUG_EMB), jnp.float32) * 0.5
    p['wdrug'] = lin_t(ks[10], DRUG_EMB, DRUG_HID)
    p['bdrug'] = bias(ks[11], DRUG_HID)
    # head: nn.Linear(HEAD_DIM, 1)
    p['wl'] = lin_t(ks[12], HEAD_DIM, 1)
    p['bl'] = jax.random.normal(ks[13], (1, 1), jnp.float32) * 0.1
    return p


if __name__ == "__main__":
    key = jax.random.PRNGKey(0)
    k1, k2, kp = jax.random.split(key, 3)

    feats = jax.random.normal(k1, (B, N, D), jnp.float32)
    coors = jax.random.normal(k2, (B, N, 3), jnp.float32)
    mask = jnp.array([[1, 1, 1, 1, 1, 1, 0, 0],
                      [1, 1, 1, 1, 1, 1, 1, 1]], jnp.float32)[..., None]   # (B, N, 1)
    drugs = jnp.array([3, 7], jnp.int32)      # drug ids (stand-in for drug-graph dict keys)
    params = init_params(kp)

    slab = jax.block_until_ready(pack_param_slab(params))   # param-prep time, off the hot path

    preds = egnn_pli_forward(feats, coors, mask, drugs, slab)
    preds = jax.block_until_ready(preds)

    ref = ref_model(feats, coors, mask, params['drug_table'][drugs], params)
    assert preds.shape == (B, 1)
    assert bool(jnp.all(jnp.isfinite(preds)))
    assert bool(jnp.allclose(preds, ref, rtol=1e-2, atol=1e-2)), (preds, ref)
    print("KERNEL_OK")
</pallas_src>

<mosaic_0001>
module attributes {stable_mosaic.version = 11 : i64} {
  func.func @fused_egnn_pli_kernel(%arg0: memref<2xi32, #tpu.memory_space<smem>>, %arg1: memref<2x8x32xf32, #tpu.memory_space<vmem>>, %arg2: memref<2x8x3xf32, #tpu.memory_space<vmem>>, %arg3: memref<2x8x1xf32, #tpu.memory_space<vmem>>, %arg4: memref<256x32xf32, #tpu.memory_space<vmem>>, %arg5: memref<8x128xf32, #tpu.memory_space<vmem>>) attributes {dimension_semantics = [], scalar_prefetch = 0 : i64, scratch_operands = 0 : i64, tpu.core_type = #tpu.core_type<tc>} {
    %c0 = arith.constant 0 : index
    %c0_0 = arith.constant 0 : index
    %c0_1 = arith.constant 0 : index
    %0 = vector.load %arg1[%c0, %c0_0, %c0_1] : memref<2x8x32xf32, #tpu.memory_space<vmem>>, vector<2x8x32xf32>
    %1 = vector.shape_cast %0 : vector<2x8x32xf32> to vector<16x32xf32>
    %c0_2 = arith.constant 0 : index
    %c0_3 = arith.constant 0 : index
    %c0_4 = arith.constant 0 : index
    %2 = vector.load %arg2[%c0_2, %c0_3, %c0_4] : memref<2x8x3xf32, #tpu.memory_space<vmem>>, vector<2x8x3xf32>
    %c0_5 = arith.constant 0 : index
    %c0_6 = arith.constant 0 : index
    %c0_7 = arith.constant 0 : index
    %3 = vector.load %arg3[%c0_5, %c0_6, %c0_7] : memref<2x8x1xf32, #tpu.memory_space<vmem>>, vector<2x8x1xf32>
    %c0_8 = arith.constant 0 : index
    %c0_9 = arith.constant 0 : index
    %4 = vector.load %arg4[%c0_8, %c0_9] : memref<256x32xf32, #tpu.memory_space<vmem>>, vector<32x32xf32>
    %c32 = arith.constant 32 : index
    %c0_10 = arith.constant 0 : index
    %5 = vector.load %arg4[%c32, %c0_10] : memref<256x32xf32, #tpu.memory_space<vmem>>, vector<32x32xf32>
    %c64 = arith.constant 64 : index
    %c0_11 = arith.constant 0 : index
    %6 = vector.load %arg4[%c64, %c0_11] : memref<256x32xf32, #tpu.memory_space<vmem>>, vector<32x32xf32>
    %c96 = arith.constant 96 : index
    %c0_12 = arith.constant 0 : index
    %7 = vector.load %arg4[%c96, %c0_12] : memref<256x32xf32, #tpu.memory_space<vmem>>, vector<32x32xf32>
    %c128 = arith.constant 128 : index
    %c0_13 = arith.constant 0 : index
    %8 = vector.load %arg4[%c128, %c0_13] : memref<256x32xf32, #tpu.memory_space<vmem>>, vector<32x32xf32>
    %c160 = arith.constant 160 : index
    %c0_14 = arith.constant 0 : index
    %9 = vector.load %arg4[%c160, %c0_14] : memref<256x32xf32, #tpu.memory_space<vmem>>, vector<32x32xf32>
    %c192 = arith.constant 192 : index
    %c0_15 = arith.constant 0 : index
    %10 = vector.load %arg4[%c192, %c0_15] : memref<256x32xf32, #tpu.memory_space<vmem>>, vector<32x32xf32>
    %c240 = arith.constant 240 : index
    %c0_16 = arith.constant 0 : index
    %11 = vector.load %arg4[%c240, %c0_16] : memref<256x32xf32, #tpu.memory_space<vmem>>, vector<16x32xf32>
    %12 = vector.extract_strided_slice %11 {offsets = [0, 0], sizes = [1, 32], strides = [1, 1]} : vector<16x32xf32> to vector<1x32xf32>
    %13 = vector.extract_strided_slice %11 {offsets = [1, 0], sizes = [1, 32], strides = [1, 1]} : vector<16x32xf32> to vector<1x32xf32>
    %14 = vector.extract_strided_slice %11 {offsets = [2, 0], sizes = [1, 32], strides = [1, 1]} : vector<16x32xf32> to vector<1x32xf32>
    %15 = vector.extract_strided_slice %11 {offsets = [3, 0], sizes = [1, 32], strides = [1, 1]} : vector<16x32xf32> to vector<1x32xf32>
    %16 = vector.extract_strided_slice %11 {offsets = [4, 0], sizes = [1, 32], strides = [1, 1]} : vector<16x32xf32> to vector<1x32xf32>
    %17 = vector.extract_strided_slice %11 {offsets = [5, 0], sizes = [1, 32], strides = [1, 1]} : vector<16x32xf32> to vector<1x32xf32>
    %18 = vector.extract_strided_slice %11 {offsets = [6, 0], sizes = [1, 32], strides = [1, 1]} : vector<16x32xf32> to vector<1x32xf32>
    %19 = vector.extract_strided_slice %11 {offsets = [7, 0], sizes = [1, 32], strides = [1, 1]} : vector<16x32xf32> to vector<1x32xf32>
    %20 = vector.extract_strided_slice %11 {offsets = [8, 0], sizes = [1, 32], strides = [1, 1]} : vector<16x32xf32> to vector<1x32xf32>
    %21 = vector.shape_cast %2 : vector<2x8x3xf32> to vector<2x8x1x3xf32>
    %22 = vector.shape_cast %2 : vector<2x8x3xf32> to vector<2x1x8x3xf32>
    %23 = vector.extract_strided_slice %21 {offsets = [0, 0, 0, 0], sizes = [2, 8, 1, 1], strides = [1, 1, 1, 1]} : vector<2x8x1x3xf32> to vector<2x8x1x1xf32>
    %24 = vector.extract_strided_slice %22 {offsets = [0, 0, 0, 0], sizes = [2, 1, 8, 1], strides = [1, 1, 1, 1]} : vector<2x1x8x3xf32> to vector<2x1x8x1xf32>
    %25 = vector.broadcast %23 : vector<2x8x1x1xf32> to vector<2x8x8x1xf32>
    %26 = vector.broadcast %24 : vector<2x1x8x1xf32> to vector<2x8x8x1xf32>
    %27 = arith.subf %25, %26 : vector<2x8x8x1xf32>
    %28 = vector.extract_strided_slice %21 {offsets = [0, 0, 0, 1], sizes = [2, 8, 1, 1], strides = [1, 1, 1, 1]} : vector<2x8x1x3xf32> to vector<2x8x1x1xf32>
    %29 = vector.extract_strided_slice %22 {offsets = [0, 0, 0, 1], sizes = [2, 1, 8, 1], strides = [1, 1, 1, 1]} : vector<2x1x8x3xf32> to vector<2x1x8x1xf32>
    %30 = vector.broadcast %28 : vector<2x8x1x1xf32> to vector<2x8x8x1xf32>
    %31 = vector.broadcast %29 : vector<2x1x8x1xf32> to vector<2x8x8x1xf32>
    %32 = arith.subf %30, %31 : vector<2x8x8x1xf32>
    %33 = vector.extract_strided_slice %21 {offsets = [0, 0, 0, 2], sizes = [2, 8, 1, 1], strides = [1, 1, 1, 1]} : vector<2x8x1x3xf32> to vector<2x8x1x1xf32>
    %34 = vector.extract_strided_slice %22 {offsets = [0, 0, 0, 2], sizes = [2, 1, 8, 1], strides = [1, 1, 1, 1]} : vector<2x1x8x3xf32> to vector<2x1x8x1xf32>
    %35 = vector.broadcast %33 : vector<2x8x1x1xf32> to vector<2x8x8x1xf32>
    %36 = vector.broadcast %34 : vector<2x1x8x1xf32> to vector<2x8x8x1xf32>
    %37 = arith.subf %35, %36 : vector<2x8x8x1xf32>
    %38 = arith.mulf %27, %27 : vector<2x8x8x1xf32>
    %39 = arith.mulf %32, %32 : vector<2x8x8x1xf32>
    %40 = arith.addf %38, %39 : vector<2x8x8x1xf32>
    %41 = arith.mulf %37, %37 : vector<2x8x8x1xf32>
    %42 = arith.addf %40, %41 : vector<2x8x8x1xf32>
    %cst = arith.constant dense<0.000000e+00> : vector<16x32xf32>
    %43 = tpu.matmul %1, %4, %cst {dimension_numbers = #tpu.dot_dimension_numbers<[1], [0], [0], [1], [0, 0, 1, 1], [], []>} : vector<16x32xf32>, vector<32x32xf32>, vector<16x32xf32> -> vector<16x32xf32>
    %cst_17 = arith.constant dense<0.000000e+00> : vector<16x32xf32>
    %44 = tpu.matmul %1, %5, %cst_17 {dimension_numbers = #tpu.dot_dimension_numbers<[1], [0], [0], [1], [0, 0, 1, 1], [], []>} : vector<16x32xf32>, vector<32x32xf32>, vector<16x32xf32> -> vector<16x32xf32>
    %45 = vector.shape_cast %43 : vector<16x32xf32> to vector<2x8x1x32xf32>
    %46 = vector.shape_cast %44 : vector<16x32xf32> to vector<2x1x8x32xf32>
    %47 = vector.broadcast %45 : vector<2x8x1x32xf32> to vector<2x8x8x32xf32>
    %48 = vector.broadcast %46 : vector<2x1x8x32xf32> to vector<2x8x8x32xf32>
    %49 = arith.addf %47, %48 : vector<2x8x8x32xf32>
    %50 = vector.shape_cast %12 : vector<1x32xf32> to vector<1x1x1x32xf32>
    %51 = vector.broadcast %42 : vector<2x8x8x1xf32> to vector<2x8x8x32xf32>
    %52 = vector.broadcast %50 : vector<1x1x1x32xf32> to vector<2x8x8x32xf32>
    %53 = arith.mulf %51, %52 : vector<2x8x8x32xf32>
    %54 = arith.addf %49, %53 : vector<2x8x8x32xf32>
    %55 = vector.shape_cast %13 : vector<1x32xf32> to vector<1x1x1x32xf32>
    %56 = vector.broadcast %55 : vector<1x1x1x32xf32> to vector<2x8x8x32xf32>
    %57 = arith.addf %54, %56 : vector<2x8x8x32xf32>
    %58 = arith.negf %57 : vector<2x8x8x32xf32>
    %59 = math.exp %58 : vector<2x8x8x32xf32>
    %cst_18 = arith.constant 1.000000e+00 : f32
    %60 = vector.broadcast %cst_18 : f32 to vector<2x8x8x32xf32>
    %61 = arith.addf %60, %59 : vector<2x8x8x32xf32>
    %62 = arith.divf %60, %61 : vector<2x8x8x32xf32>
    %63 = arith.mulf %57, %62 : vector<2x8x8x32xf32>
    %64 = vector.shape_cast %63 : vector<2x8x8x32xf32> to vector<128x32xf32>
    %cst_19 = arith.constant dense<0.000000e+00> : vector<128x32xf32>
    %65 = tpu.matmul %64, %6, %cst_19 {dimension_numbers = #tpu.dot_dimension_numbers<[1], [0], [0], [1], [0, 0, 1, 1], [], []>} : vector<128x32xf32>, vector<32x32xf32>, vector<128x32xf32> -> vector<128x32xf32>
    %66 = vector.broadcast %14 : vector<1x32xf32> to vector<128x32xf32>
    %67 = arith.addf %65, %66 : vector<128x32xf32>
    %68 = arith.negf %67 : vector<128x32xf32>
    %69 = math.exp %68 : vector<128x32xf32>
    %cst_20 = arith.constant 1.000000e+00 : f32
    %70 = vector.broadcast %cst_20 : f32 to vector<128x32xf32>
    %71 = arith.addf %70, %69 : vector<128x32xf32>
    %72 = arith.divf %70, %71 : vector<128x32xf32>
    %73 = arith.mulf %67, %72 : vector<128x32xf32>
    %74 = vector.shape_cast %3 : vector<2x8x1xf32> to vector<2x1x8x1xf32>
    %75 = vector.shape_cast %73 : vector<128x32xf32> to vector<2x8x8x32xf32>
    %76 = vector.broadcast %74 : vector<2x1x8x1xf32> to vector<2x8x8x32xf32>
    %77 = arith.mulf %75, %76 : vector<2x8x8x32xf32>
    %cst_21 = arith.constant dense<0.000000e+00> : vector<2x8x32xf32>
    %78 = vector.multi_reduction <add>, %77, %cst_21 [2] : vector<2x8x8x32xf32> to vector<2x8x32xf32>
    %79 = vector.shape_cast %78 : vector<2x8x32xf32> to vector<16x32xf32>
    %cst_22 = arith.constant dense<0.000000e+00> : vector<16x32xf32>
    %80 = tpu.matmul %1, %7, %cst_22 {dimension_numbers = #tpu.dot_dimension_numbers<[1], [0], [0], [1], [0, 0, 1, 1], [], []>} : vector<16x32xf32>, vector<32x32xf32>, vector<16x32xf32> -> vector<16x32xf32>
    %cst_23 = arith.constant dense<0.000000e+00> : vector<16x32xf32>
    %81 = tpu.matmul %79, %8, %cst_23 {dimension_numbers = #tpu.dot_dimension_numbers<[1], [0], [0], [1], [0, 0, 1, 1], [], []>} : vector<16x32xf32>, vector<32x32xf32>, vector<16x32xf32> -> vector<16x32xf32>
    %82 = arith.addf %80, %81 : vector<16x32xf32>
    %83 = vector.broadcast %15 : vector<1x32xf32> to vector<16x32xf32>
    %84 = arith.addf %82, %83 : vector<16x32xf32>
    %85 = arith.negf %84 : vector<16x32xf32>
    %86 = math.exp %85 : vector<16x32xf32>
    %cst_24 = arith.constant 1.000000e+00 : f32
    %87 = vector.broadcast %cst_24 : f32 to vector<16x32xf32>
    %88 = arith.addf %87, %86 : vector<16x32xf32>
    %89 = arith.divf %87, %88 : vector<16x32xf32>
    %90 = arith.mulf %84, %89 : vector<16x32xf32>
    %cst_25 = arith.constant dense<0.000000e+00> : vector<16x32xf32>
    %91 = tpu.matmul %90, %9, %cst_25 {dimension_numbers = #tpu.dot_dimension_numbers<[1], [0], [0], [1], [0, 0, 1, 1], [], []>} : vector<16x32xf32>, vector<32x32xf32>, vector<16x32xf32> -> vector<16x32xf32>
    %92 = arith.addf %1, %91 : vector<16x32xf32>
    %93 = vector.broadcast %16 : vector<1x32xf32> to vector<16x32xf32>
    %94 = arith.addf %92, %93 : vector<16x32xf32>
    %95 = vector.shape_cast %3 : vector<2x8x1xf32> to vector<16x1xf32>
    %96 = vector.broadcast %95 : vector<16x1xf32> to vector<16x32xf32>
    %97 = arith.mulf %94, %96 : vector<16x32xf32>
    %98 = vector.shape_cast %97 : vector<16x32xf32> to vector<2x8x32xf32>
    %cst_26 = arith.constant dense<0.000000e+00> : vector<2x32xf32>
    %99 = vector.multi_reduction <add>, %98, %cst_26 [1] : vector<2x8x32xf32> to vector<2x32xf32>
    %cst_27 = arith.constant dense<0.000000e+00> : vector<2x1xf32>
    %100 = vector.multi_reduction <add>, %3, %cst_27 [1] : vector<2x8x1xf32> to vector<2x1xf32>
    %cst_28 = arith.constant 1.000000e+00 : f32
    %101 = vector.broadcast %cst_28 : f32 to vector<2x1xf32>
    %102 = arith.maximumf %100, %101 : vector<2x1xf32>
    %103 = tpu.reciprocal %102 {approx = true} : vector<2x1xf32> -> vector<2x1xf32>
    %104 = vector.broadcast %103 : vector<2x1xf32> to vector<2x32xf32>
    %105 = arith.mulf %99, %104 : vector<2x32xf32>
    %c0_29 = arith.constant 0 : index
    %106 = memref.load %arg0[%c0_29] : memref<2xi32, #tpu.memory_space<smem>>
    %c224_i32 = arith.constant 224 : i32
    %107 = arith.addi %c224_i32, %106 : i32
    %108 = arith.index_cast %107 : i32 to index
    %c0_30 = arith.constant 0 : index
    %109 = vector.load %arg4[%108, %c0_30] : memref<256x32xf32, #tpu.memory_space<vmem>>, vector<1x32xf32>
    %c1 = arith.constant 1 : index
    %110 = memref.load %arg0[%c1] : memref<2xi32, #tpu.memory_space<smem>>
    %c224_i32_31 = arith.constant 224 : i32
    %111 = arith.addi %c224_i32_31, %110 : i32
    %112 = arith.index_cast %111 : i32 to index
    %c0_32 = arith.constant 0 : index
    %113 = vector.load %arg4[%112, %c0_32] : memref<256x32xf32, #tpu.memory_space<vmem>>, vector<1x32xf32>
    %114 = tpu.concatenate %109, %113 in 0 : vector<1x32xf32>, vector<1x32xf32> -> vector<2x32xf32>
    %cst_33 = arith.constant dense<0.000000e+00> : vector<2x32xf32>
    %115 = tpu.matmul %114, %10, %cst_33 {dimension_numbers = #tpu.dot_dimension_numbers<[1], [0], [0], [1], [0, 0, 1, 1], [], []>} : vector<2x32xf32>, vector<32x32xf32>, vector<2x32xf32> -> vector<2x32xf32>
    %116 = vector.broadcast %17 : vector<1x32xf32> to vector<2x32xf32>
    %117 = arith.addf %115, %116 : vector<2x32xf32>
    %cst_34 = arith.constant 0.000000e+00 : f32
    %118 = vector.broadcast %cst_34 : f32 to vector<2x32xf32>
    %119 = arith.maximumf %117, %118 : vector<2x32xf32>
    %120 = vector.broadcast %18 : vector<1x32xf32> to vector<2x32xf32>
    %121 = arith.mulf %105, %120 : vector<2x32xf32>
    %122 = vector.broadcast %19 : vector<1x32xf32> to vector<2x32xf32>
    %123 = arith.mulf %119, %122 : vector<2x32xf32>
    %124 = arith.addf %121, %123 : vector<2x32xf32>
    %125 = vector.broadcast %20 : vector<1x32xf32> to vector<2x32xf32>
    %126 = arith.addf %124, %125 : vector<2x32xf32>
    %cst_35 = arith.constant dense<0.000000e+00> : vector<2xf32>
    %127 = vector.multi_reduction <add>, %126, %cst_35 [1] : vector<2x32xf32> to vector<2xf32>
    %128 = vector.shape_cast %127 : vector<2xf32> to vector<2x1xf32>
    %cst_36 = arith.constant 0.000000e+00 : f32
    %129 = vector.broadcast %cst_36 : f32 to vector<6x1xf32>
    %130 = tpu.concatenate %128, %129 in 0 : vector<2x1xf32>, vector<6x1xf32> -> vector<8x1xf32>
    %131 = vector.shape_cast %130 : vector<8x1xf32> to vector<8x1xf32>
    %132 = vector.broadcast %131 : vector<8x1xf32> to vector<8x128xf32>
    %c0_37 = arith.constant 0 : index
    %c0_38 = arith.constant 0 : index
    %133 = vector.load %arg5[%c0_37, %c0_38] : memref<8x128xf32, #tpu.memory_space<vmem>>, vector<8x128xf32>
    tpu.vector_store %arg5[%c0_37, %c0_38], %132 {strides = array<i32>} : memref<8x128xf32, #tpu.memory_space<vmem>>, vector<8x128xf32>,
    return
  }
}

</mosaic_0001>

<bundles_post_ra>
// kernel: egnn_pli_forward.1
= control target key start
LH: loop header
LB: loop body
LE: loop exit
PB: predicated region body
PF: predicated region fallthrough
CT: control target
= control target key end

     0   :  { %10 = vsyncpa [#allocation3], 0  ;;  %s3071_s0 = inlined_call_operand.vmem [shape: s32[2], index: 0, kind: input, shape index: {}]   ;;  %s3072_s1 = inlined_call_operand.vmem [shape: f32[2,8,32], index: 1, kind: input, shape index: {}]   ;;  %s3073_s2 = inlined_call_operand.vmem [shape: f32[2,8,3], index: 2, kind: input, shape index: {}]   ;;  %s3074_s3 = inlined_call_operand.vmem [shape: f32[2,8,1], index: 3, kind: input, shape index: {}]   ;;  %s3075_s4 = inlined_call_operand.vmem [shape: f32[256,32], index: 4, kind: input, shape index: {}]   ;;  %s3076_s5 = inlined_call_operand.vmem [shape: f32[8,128], index: 5, kind: output, shape index: {}]  }
   0x1   :  { %s17_s20 = sshll.u32 %s3071_s0, 4  ;;  %s18_s20 = int_to_ptr.vmem [resolvable:$true] %s17_s20 }
   0x2   :  { %s2388_s21 = scalar_lea.vmem %s18_s20, 16  ;;  %p2393_p1 = scmp.lt.s32.totalorder %s18_s20, %s18_s20 }
   0x3   :  { %p2389_p0 = scmp.ne.s32.totalorder %s18_s20, %s2388_s21  ;;  %p2394_p2 = scmp.lt.s32.totalorder %s2388_s21, %s2388_s21 }
   0x5   :  { %p2395_p3 = por %p2394_p2, %p2393_p1 }
   0x7   :  { %p2396_p4 = pnand %p2395_p3, %p2389_p0 }
   0x9   :  { %2399 = shalt.err (!%p2396_p4)
}
   0xa   :  { %s2402_s22 = smov [#allocation2]  }
   0xb   :  { %20 = dma.vmem_to_smem %s18_s20, 16, %s2402_s22, [#allocation3]  }
   0xc   :  { %2400 = dma.done.wait [#allocation3], 16  }
   0xd   :  { %2401 = vsyncadd [#allocation3], 4294967280 }
   0xe   :  { %32 = sfence }
   0xf   :  { %v2446_v0 = vld [vmem:[%s3073_s2] sm:$0xff]  ;;  %v75_v1 = vlaneseq  ;;  %v2403_v3 = vmov 1966171168   ;;  %v40_v5 = vld [vmem:[%s3075_s4 + $0x8] sm:$0xff]  ;;  %v41_v6 = vld [vmem:[%s3075_s4 + $0x10] sm:$0xff]  ;;  %vm425_vm0 = vcmask 261120  }
  0x10   :  { %v39_v2 = vld [vmem:[%s3075_s4] sm:$0xff]  ;;  %v73_v4 = vunpack.c.l.s4 %v2403_v3  ;;  %v42_v7 = vld [vmem:[%s3075_s4 + $0x18] sm:$0xff]  ;;  %v44_v12 = vld [vmem:[%s3075_s4 + $0x28] sm:$0xff]  ;;  %v71_v15 = vcombine.high %v2446_v0, %v2446_v0  ;;  %v2404_v24 = vmov 0   ;;  %s2405_s19 = smov 126   ;;  %s2406_s20 = smov 127  }
  0x11   :  { %v2460_v8 = vshrl.u32 %v75_v1, 7  ;;  %v2177_v9 = vpack.c.bf16 %v40_v5, %v39_v2  ;;  %v2181_v10 = vpack.c.bf16 %v42_v7, %v41_v6  ;;  %v43_v11 = vld [vmem:[%s3075_s4 + $0x20] sm:$0xff]  ;;  %v45_v17 = vld [vmem:[%s3075_s4 + $0x30] sm:$0xff]  ;;  %v46_v18 = vld [vmem:[%s3075_s4 + $0x38] sm:$0xff]  ;;  %2241 = vset.pattern.permute.xlu0 %v2404_v24  ;;  %2242 = vset.pattern.permute.xlu1 %v2404_v24  ;;  %vm1789_vm1 = vcmask 7168   ;;  %s2021_s10 = sld [smem:[#allocation2 + $0x1]] }
  0x12   :  { %v33_v13 = vld [vmem:[%s3072_s1] sm:$0xff]  ;;  %v74_v14 = vunpack.c.0.s8 %v73_v4  ;;  %v2185_v16 = vpack.c.bf16 %v44_v12, %v43_v11  ;;  %v2189_v19 = vpack.c.bf16 %v46_v18, %v45_v17  ;;  %v34_v29 = vld [vmem:[%s3072_s1 + $0x8] sm:$0xff]  ;;  %vm1489_vm2 = vcmask 1041409   ;;  %s1820_s11 = sld [smem:[#allocation2]] }
  0x13   :  { %2087 = vmatprep.mubr.msk.f32.mxu0 %vm425_vm0, %v33_v13  ;;  %2098 = vmatprep.mubr.msk.f32.mxu1 %vm425_vm0, %v33_v13  ;;  %v2487_v22 = vsub.s32 0, %v2460_v8  ;;  %v2529_v49 = vld [vmem:[%s3073_s2 + $0x8] sm:$0xff]  ;;  %vm1491_vm3 = vcmask 1042434   ;;  %vm1493_vm4 = vcmask 1043459   ;;  %vm1495_vm5 = vcmask 1044484  }
  0x14   :  { %2178 = vmatprep.subr.bf16.mxu0 %v2177_v9  ;;  %v2482_v20 = vsub.s32 %v74_v14, %v2460_v8  ;;  %2186 = vmatprep.subr.bf16.mxu1 %v2185_v16  ;;  %v120_v1 = vcombine.high %v2529_v49, %v2529_v49  ;;  %vm1497_vm6 = vcmask 1045509   ;;  %vm1499_vm7 = vcmask 1046534  }
  0x15   :  { %2180 = vmatpush3.bf16.msra.mxu0 %v2177_v9  ;;  %2188 = vmatpush3.bf16.msra.mxu1 %v2185_v16  ;;  %vm1501_vm8 = vcmask 1047559   ;;  %vm2408_vm9 = vmmov 0   ;;  %vm1831_vm10 = vcmask 1040384   ;;  %vm1939_vm11 = vcmask 254976  }
  0x16   :  { %2182 = vmatprep.subr.bf16.mxu0 %v2181_v10  ;;  %v78_v21 = vrot.slane %v2446_v0, %v2482_v20  ;;  %v85_v23 = vrot.slane %v71_v15, %v2482_v20  ;;  %2190 = vmatprep.subr.bf16.mxu1 %v2189_v19  ;;  %v127_v51 = vrot.slane %v2529_v49, %v2482_v20  ;;  %vm1943_vm12 = vcmask 1041408  }
  0x17   :  { %v134_v5 = vrot.slane %v120_v1, %v2482_v20  ;;  %s1958_s18 = scalar_lea.vmem %s3075_s4, %s2021_s10 }
  0x18   :  { %v94_v25 = vrot.slane %v78_v21, %v2482_v20  ;;  %v86_v26 = vcombine.high %v78_v21, %v78_v21  ;;  %v101_v27 = vrot.slane %v85_v23, %v2482_v20  ;;  %v87_v28 = vcombine.high %v85_v23, %v85_v23  ;;  %s1956_s24 = scalar_lea.vmem %s3075_s4, %s1820_s11 }
  0x19   :  { %2184 = vmatpush3.bf16.msra.mxu0 %v2181_v10  ;;  %2192 = vmatpush3.bf16.msra.mxu1 %v2189_v19  ;;  %v135_v55 = vcombine.high %v127_v51, %v127_v51  ;;  %v143_v59 = vrot.slane %v127_v51, %v2482_v20  ;;  %v136_v11 = vcombine.high %v134_v5, %v134_v5 }
  0x1a   :  { %v172_v30 = vrot.slane %v94_v25, %v2487_v22  ;;  %v108_v31 = vrot.slane %v86_v26, %v2482_v20  ;;  %v188_v32 = vrot.slane %v101_v27, %v2487_v22  ;;  %v115_v33 = vrot.slane %v87_v28, %v2482_v20 }
  0x1b   :  { %v116_v34 = vcombine.high %v94_v25, %v94_v25  ;;  %v117_v50 = vcombine.high %v101_v27, %v101_v27  ;;  %v157_v62 = vrot.slane %v135_v55, %v2482_v20  ;;  %v204_v63 = vrot.slane %v143_v59, %v2487_v22 }
  0x1c   :  { %2088 = vmatmul.mubr.msk.f32.vlgmr.msra.gmra.mrb[0].mxu0 %vm425_vm0, %v34_v29  ;;  %v249_v35 = vsub.f32 %v172_v30, %v2446_v0  ;;  %v176_v36 = vrot.slane %v108_v31, %v2487_v22  ;;  %v253_v37 = vsub.f32 %v188_v32, %v2446_v0  ;;  %v192_v38 = vrot.slane %v115_v33, %v2487_v22 }
  0x1d   :  { %2099 = vmatmul.mubr.msk.f32.vlgmr.msra.gmra.mrb[0].mxu1 %vm425_vm0, %v34_v29  ;;  %v180_v41 = vrot.slane %v116_v34, %v2487_v22  ;;  %v118_v42 = vcombine.high %v108_v31, %v108_v31  ;;  %v119_v54 = vcombine.high %v115_v33, %v115_v33  ;;  %v196_v57 = vrot.slane %v117_v50, %v2487_v22 }
  0x1e   :  { %v2505_v39 = vmul.f32 %v249_v35, %v249_v35  ;;  %v250_v40 = vsub.f32 %v176_v36, %v2446_v0  ;;  %v2515_v44 = vmul.f32 %v253_v37, %v253_v37  ;;  %v254_v45 = vsub.f32 %v192_v38, %v2446_v0 }
  0x1f   :  { %v251_v47 = vsub.f32 %v180_v41, %v2446_v0  ;;  %v184_v48 = vrot.slane %v118_v42, %v2487_v22  ;;  %v200_v58 = vrot.slane %v119_v54, %v2487_v22  ;;  %v255_v60 = vsub.f32 %v196_v57, %v2446_v0 }
  0x20   :  { %361 = vrot.lane.b32.xlu1 %v2505_v39, %s2405_s19  ;;  %297 = vrot.lane.b32.xlu0 %v2505_v39, %s2406_s20  ;;  %v2513_v43 = vmul.f32 %v250_v40, %v250_v40  ;;  %v2522_v46 = vmul.f32 %v254_v45, %v254_v45  ;;  %v208_v4 = vrot.slane %v157_v62, %v2487_v22 }
  0x21   :  { %v2537_v52 = vmul.f32 %v251_v47, %v251_v47  ;;  %v252_v53 = vsub.f32 %v184_v48, %v2446_v0  ;;  %v256_v61 = vsub.f32 %v200_v58, %v2446_v0  ;;  %v2563_v2 = vmul.f32 %v255_v60, %v255_v60 }
  0x22   :  { %v257_v0 = vsub.f32 %v204_v63, %v2529_v49  ;;  %v258_v6 = vsub.f32 %v208_v4, %v2529_v49  ;;  %v165_v7 = vcombine.high %v143_v59, %v143_v59  ;;  %v167_v9 = vcombine.high %v157_v62, %v157_v62 }
  0x23   :  { %v2544_v56 = vmul.f32 %v252_v53, %v252_v53  ;;  %v2565_v3 = vmul.f32 %v256_v61, %v256_v61  ;;  %v150_v15 = vrot.slane %v134_v5, %v2482_v20  ;;  %v164_v18 = vrot.slane %v136_v11, %v2482_v20 }
  0x24   :  { %363 = vrot.lane.b32.xlu1 %v2513_v43, %s2405_s19  ;;  %305 = vrot.lane.b32.xlu0 %v2515_v44, %s2406_s20  ;;  %v2575_v10 = vmul.f32 %v257_v0, %v257_v0  ;;  %v2581_v12 = vmul.f32 %v258_v6, %v258_v6  ;;  %v212_v13 = vrot.slane %v165_v7, %v2487_v22 }
  0x25   :  { %v216_v14 = vrot.slane %v167_v9, %v2487_v22  ;;  %v220_v19 = vrot.slane %v150_v15, %v2487_v22  ;;  %v224_v24 = vrot.slane %v164_v18, %v2487_v22  ;;  %v166_v27 = vcombine.high %v150_v15, %v150_v15 }
  0x26   :  { %v259_v16 = vsub.f32 %v212_v13, %v2529_v49  ;;  %v168_v28 = vcombine.high %v164_v18, %v164_v18 }
  0x27   :  { %v260_v17 = vsub.f32 %v216_v14, %v2529_v49  ;;  %v261_v25 = vsub.f32 %v220_v19, %v2529_v49  ;;  %v262_v26 = vsub.f32 %v224_v24, %v2529_v49  ;;  %v228_v31 = vrot.slane %v166_v27, %v2487_v22 }
  0x28   :  { %299 = vrot.lane.b32.xlu0 %v2513_v43, %s2406_s20  ;;  %307 = vrot.lane.b32.xlu1 %v2522_v46, %s2406_s20  ;;  %v2598_v21 = vmul.f32 %v259_v16, %v259_v16  ;;  %v232_v32 = vrot.slane %v168_v28, %v2487_v22 }
  0x29   :  { %v2600_v23 = vmul.f32 %v260_v17, %v260_v17  ;;  %v2609_v29 = vmul.f32 %v261_v25, %v261_v25  ;;  %v2615_v30 = vmul.f32 %v262_v26, %v262_v26  ;;  %v263_v33 = vsub.f32 %v228_v31, %v2529_v49 }
  0x2a   :  { %v264_v34 = vsub.f32 %v232_v32, %v2529_v49  ;;  %v47_v32 = vld [vmem:[%s3075_s4 + $0x40] sm:$0xff] }
  0x2b   :  { %v2629_v35 = vmul.f32 %v263_v33, %v263_v33  ;;  %v48_v33 = vld [vmem:[%s3075_s4 + $0x48] sm:$0xff] }
  0x2c   :  { %301 = vrot.lane.b32.xlu0 %v2537_v52, %s2406_s20  ;;  %371 = vrot.lane.b32.xlu1 %v2522_v46, %s2405_s19  ;;  %v2631_v36 = vmul.f32 %v264_v34, %v264_v34 }
  0x30   :  { %365 = vrot.lane.b32.xlu0 %v2537_v52, %s2405_s19  ;;  %303 = vrot.lane.b32.xlu1 %v2544_v56, %s2406_s20 }
  0x34   :  { %369 = vrot.lane.b32.xlu0 %v2515_v44, %s2405_s19  ;;  %367 = vrot.lane.b32.xlu1 %v2544_v56, %s2405_s19 }
  0x38   :  { %309 = vrot.lane.b32.xlu0 %v2563_v2, %s2406_s20  ;;  %311 = vrot.lane.b32.xlu1 %v2565_v3, %s2406_s20 }
  0x3c   :  { %373 = vrot.lane.b32.xlu0 %v2563_v2, %s2405_s19  ;;  %375 = vrot.lane.b32.xlu1 %v2565_v3, %s2405_s19 }
  0x40   :  { %313 = vrot.lane.b32.xlu0 %v2575_v10, %s2406_s20  ;;  %315 = vrot.lane.b32.xlu1 %v2581_v12, %s2406_s20 }
  0x44   :  { %377 = vrot.lane.b32.xlu0 %v2575_v10, %s2405_s19  ;;  %379 = vrot.lane.b32.xlu1 %v2581_v12, %s2405_s19 }
  0x48   :  { %317 = vrot.lane.b32.xlu0 %v2598_v21, %s2406_s20  ;;  %319 = vrot.lane.b32.xlu1 %v2600_v23, %s2406_s20 }
  0x4c   :  { %381 = vrot.lane.b32.xlu0 %v2598_v21, %s2405_s19  ;;  %383 = vrot.lane.b32.xlu1 %v2600_v23, %s2405_s19 }
  0x50   :  { %321 = vrot.lane.b32.xlu0 %v2609_v29, %s2406_s20  ;;  %323 = vrot.lane.b32.xlu1 %v2615_v30, %s2406_s20 }
  0x54   :  { %385 = vrot.lane.b32.xlu0 %v2609_v29, %s2405_s19  ;;  %387 = vrot.lane.b32.xlu1 %v2615_v30, %s2405_s19 }
  0x58   :  { %325 = vrot.lane.b32.xlu0 %v2629_v35, %s2406_s20  ;;  %327 = vrot.lane.b32.xlu1 %v2631_v36, %s2406_s20 }
  0x5c   :  { %389 = vrot.lane.b32.xlu0 %v2629_v35, %s2405_s19  ;;  %391 = vrot.lane.b32.xlu1 %v2631_v36, %s2405_s19 }
  0x92   :  { %v362_v37 = vpop.permute.xlu1 %361  ;;  %v298_v38 = vpop.permute.xlu0 %297 }
  0x93   :  { %v345_v40 = vadd.f32 %v298_v38, %v2505_v39 }
  0x95   :  { %v409_v41 = vadd.f32 %v362_v37, %v345_v40 }
  0x96   :  { %v364_v42 = vpop.permute.xlu1 %363  ;;  %v306_v45 = vpop.permute.xlu0 %305 }
  0x97   :  { %780 = vperm.xlu0 %2241, %v409_v41   ;;  %v349_v39 = vadd.f32 %v306_v45, %v2515_v44  ;;  %v2655_v44 = vld [vmem:[%s3074_s3 + $0x8] sm:$0xff]  ;;  %v49_v41 = vld [vmem:[%s3075_s4 + $0x50] sm:$0xff] }
  0x98   :  { %v1797_v6 = vsel %vm1789_vm1, %v2655_v44, 0.0 }
  0x99   :  { %v1798_v15 = vrot.slane %v1797_v6, 4 }
  0x9a   :  { %v300_v47 = vpop.permute.xlu0 %299  ;;  %v308_v48 = vpop.permute.xlu1 %307 }
  0x9b   :  { %v346_v49 = vadd.f32 %v300_v47, %v2513_v43  ;;  %v350_v62 = vadd.f32 %v308_v48, %v2522_v46  ;;  %v1799_v19 = vadd.f32 %v1798_v15, %v1797_v6 }
  0x9d   :  { %v410_v50 = vadd.f32 %v364_v42, %v346_v49  ;;  %v1800_v31 = vrot.slane %v1799_v19, 2  ;;  %v50_v42 = vld [vmem:[%s3075_s4 + $0x58] sm:$0xff] }
  0x9e   :  { %v302_v51 = vpop.permute.xlu0 %301  ;;  %v372_v53 = vpop.permute.xlu1 %371  ;;  %v2197_v47 = vpack.c.bf16 %v50_v42, %v49_v41 }
  0x9f   :  { %785 = vperm.xlu1 %2242, %v410_v50   ;;  %v347_v54 = vadd.f32 %v302_v51, %v2537_v52  ;;  %v2650_v52 = vld [vmem:[%s3074_s3] sm:$0xff]  ;;  %v1801_v40 = vadd.f32 %v1800_v31, %v1799_v19 }
  0xa0   :  { %v1790_v0 = vsel %vm1789_vm1, %v2650_v52, 0.0 }
  0xa1   :  { %v1791_v14 = vrot.slane %v1790_v0, 4 }
  0xa2   :  { %v366_v55 = vpop.permute.xlu0 %365  ;;  %v304_v57 = vpop.permute.xlu1 %303 }
  0xa3   :  { %v411_v58 = vadd.f32 %v366_v55, %v347_v54  ;;  %v348_v59 = vadd.f32 %v304_v57, %v2544_v56  ;;  %v414_v56 = vadd.f32 %v372_v53, %v350_v62  ;;  %v1802_v53 = vrot.slane %v1801_v40, 1 }
  0xa5   :  { %790 = vperm.xlu1 %2242, %v411_v58  }
  0xa6   :  { %v370_v60 = vpop.permute.xlu0 %369  ;;  %v368_v61 = vpop.permute.xlu1 %367 }
  0xa7   :  { %v413_v63 = vadd.f32 %v370_v60, %v349_v39  ;;  %v412_v43 = vadd.f32 %v368_v61, %v348_v59  ;;  %v1803_v59 = vadd.f32 %v1802_v53, %v1801_v40 }
  0xa9   :  { %795 = vperm.xlu0 %2241, %v412_v43   ;;  %800 = vperm.xlu1 %2242, %v413_v63   ;;  %v1805_v43 = vmax.f32 %v1803_v59, 1.0 }
  0xaa   :  { %v310_v1 = vpop.permute.xlu0 %309  ;;  %v312_v4 = vpop.permute.xlu1 %311 }
  0xab   :  { %v352_v46 = vadd.f32 %v312_v4, %v2565_v3  ;;  %v351_v5 = vadd.f32 %v310_v1, %v2563_v2  ;;  %v1792_v3 = vadd.f32 %v1791_v14, %v1790_v0 }
  0xad   :  { %805 = vperm.xlu0 %2241, %v414_v56   ;;  %v1793_v28 = vrot.slane %v1792_v3, 2 }
  0xae   :  { %v374_v7 = vpop.permute.xlu0 %373  ;;  %v376_v9 = vpop.permute.xlu1 %375 }
  0xaf   :  { %v415_v11 = vadd.f32 %v374_v7, %v351_v5  ;;  %v416_v13 = vadd.f32 %v376_v9, %v352_v46  ;;  %v1794_v38 = vadd.f32 %v1793_v28, %v1792_v3 }
  0xb1   :  { %810 = vperm.xlu1 %2242, %v415_v11   ;;  %815 = vperm.xlu0 %2241, %v416_v13  }
  0xb2   :  { %v314_v16 = vpop.permute.xlu0 %313  ;;  %v316_v17 = vpop.permute.xlu1 %315 }
  0xb3   :  { %v354_v18 = vadd.f32 %v316_v17, %v2581_v12  ;;  %v353_v24 = vadd.f32 %v314_v16, %v2575_v10  ;;  %v2193_v12 = vpack.c.bf16 %v48_v33, %v47_v32 }
  0xb5   :  { %2194 = vmatprep.subr.bf16.mxu0 %v2193_v12 }
  0xb6   :  { %v378_v2 = vpop.permute.xlu0 %377  ;;  %v380_v25 = vpop.permute.xlu1 %379  ;;  %2196 = vmatpush3.bf16.msra.mxu0 %v2193_v12 }
  0xb7   :  { %v417_v26 = vadd.f32 %v378_v2, %v353_v24  ;;  %v418_v27 = vadd.f32 %v380_v25, %v354_v18  ;;  %2198 = vmatprep.subr.bf16.mxu0 %v2197_v47 }
  0xb9   :  { %820 = vperm.xlu1 %2242, %v417_v26   ;;  %825 = vperm.xlu0 %2241, %v418_v27  }
  0xba   :  { %v318_v34 = vpop.permute.xlu0 %317  ;;  %v320_v37 = vpop.permute.xlu1 %319  ;;  %2200 = vmatpush3.bf16.msra.mxu0 %v2197_v47 }
  0xbb   :  { %v356_v10 = vadd.f32 %v320_v37, %v2600_v23  ;;  %v355_v45 = vadd.f32 %v318_v34, %v2598_v21  ;;  %v1795_v23 = vrot.slane %v1794_v38, 1 }
  0xbd   :  { %v1796_v58 = vadd.f32 %v1795_v23, %v1794_v38 }
  0xbe   :  { %v382_v48 = vpop.permute.xlu0 %381  ;;  %v384_v49 = vpop.permute.xlu1 %383 }
  0xbf   :  { %v419_v50 = vadd.f32 %v382_v48, %v355_v45  ;;  %v420_v51 = vadd.f32 %v384_v49, %v356_v10  ;;  %v1804_v63 = vmax.f32 %v1796_v58, 1.0 }
  0xc1   :  { %830 = vperm.xlu1 %2242, %v419_v50   ;;  %835 = vperm.xlu0 %2241, %v420_v51   ;;  %2245 = vrcp.f32 %v1804_v63 }
  0xc2   :  { %v322_v54 = vpop.permute.xlu0 %321  ;;  %v324_v55 = vpop.permute.xlu1 %323  ;;  %2247 = vrcp.f32 %v1805_v43 }
  0xc3   :  { %v358_v57 = vadd.f32 %v324_v55, %v2615_v30  ;;  %v357_v39 = vadd.f32 %v322_v54, %v2609_v29 }
  0xc6   :  { %v386_v21 = vpop.permute.xlu0 %385  ;;  %v388_v60 = vpop.permute.xlu1 %387 }
  0xc7   :  { %v421_v61 = vadd.f32 %v386_v21, %v357_v39  ;;  %v422_v62 = vadd.f32 %v388_v60, %v358_v57 }
  0xc9   :  { %840 = vperm.xlu1 %2242, %v421_v61   ;;  %845 = vperm.xlu0 %2241, %v422_v62  }
  0xca   :  { %v326_v1 = vpop.permute.xlu0 %325  ;;  %v328_v4 = vpop.permute.xlu1 %327 }
  0xcb   :  { %v360_v56 = vadd.f32 %v328_v4, %v2631_v36  ;;  %v359_v30 = vadd.f32 %v326_v1, %v2629_v35  ;;  %v2246_v6 = vpop.eup %2245 }
  0xcc   :  { %v2248_v7 = vpop.eup %2247 }
  0xce   :  { %v390_v46 = vpop.permute.xlu0 %389  ;;  %v392_v0 = vpop.permute.xlu1 %391 }
  0xcf   :  { %v423_v5 = vadd.f32 %v390_v46, %v359_v30  ;;  %v424_v29 = vadd.f32 %v392_v0, %v360_v56 }
  0xd1   :  { %850 = vperm.xlu1 %2242, %v423_v5   ;;  %855 = vperm.xlu0 %2241, %v424_v29  }
  0xd5   :  { %1337 = vperm.xlu1 %2242, %v2650_v52   ;;  %1342 = vperm.xlu0 %2241, %v2655_v44  }
  0xd9   :  { %1815 = vperm.xlu1 %2242, %v2248_v7   ;;  %1810 = vperm.xlu0 %2241, %v2246_v6  }
  0xef   :  { %v2089_v9 = vpop.f32.mrb[0].mxu0 }
  0xf0   :  { %v633_v36 = vcombine.high %v2089_v9, %v2089_v9  ;;  %v640_v11 = vrot.slane %v2089_v9, %v2482_v20  ;;  %v498_v13 = vpop.f32.mrb[1].mxu0  ;;  %v2100_v35 = vpop.f32.mrb[0].mxu1  ;;  %v2732_v9 = vld [vmem:[%s3075_s4 + $0xf0] sm:$0xff] }
  0xf1   :  { %v584_v14 = vcombine.high %v498_v13, %v498_v13  ;;  %v591_v15 = vrot.slane %v498_v13, %v2482_v20  ;;  %v573_v16 = vpop.f32.mrb[1].mxu1 }
  0xf2   :  { %v647_v17 = vrot.slane %v633_v36, %v2482_v20  ;;  %v648_v18 = vcombine.high %v640_v11, %v640_v11  ;;  %v656_v52 = vrot.slane %v640_v11, %v2482_v20  ;;  %v2736_v36 = vrot.slane %v2732_v9, %v2487_v22 }
  0xf3   :  { %v598_v44 = vrot.slane %v584_v14, %v2482_v20  ;;  %v599_v3 = vcombine.high %v591_v15, %v591_v15  ;;  %v607_v19 = vrot.slane %v591_v15, %v2482_v20  ;;  %v896_v11 = vsub.s32 1, %v2460_v8 }
  0xf4   :  { %v649_v24 = vcombine.high %v647_v17, %v647_v17  ;;  %v663_v2 = vrot.slane %v647_v17, %v2482_v20  ;;  %v670_v25 = vrot.slane %v648_v18, %v2482_v20  ;;  %v678_v26 = vcombine.high %v656_v52, %v656_v52 }
  0xf5   :  { %v717_v27 = vrot.slane %v656_v52, %v2487_v22  ;;  %v600_v28 = vcombine.high %v598_v44, %v598_v44  ;;  %v614_v31 = vrot.slane %v598_v44, %v2482_v20  ;;  %v621_v32 = vrot.slane %v599_v3, %v2482_v20 }
  0xf6   :  { %v677_v33 = vrot.slane %v649_v24, %v2482_v20  ;;  %v679_v12 = vcombine.high %v663_v2, %v663_v2  ;;  %v680_v34 = vcombine.high %v670_v25, %v670_v25  ;;  %v629_v37 = vcombine.high %v607_v19, %v607_v19 }
  0xf7   :  { %v628_v10 = vrot.slane %v600_v28, %v2482_v20  ;;  %v630_v38 = vcombine.high %v614_v31, %v614_v31  ;;  %v631_v40 = vcombine.high %v621_v32, %v621_v32  ;;  %v685_v41 = vrot.slane %v607_v19, %v2487_v22 }
  0xf8   :  { %v689_v42 = vrot.slane %v621_v32, %v2487_v22  ;;  %v693_v45 = vrot.slane %v629_v37, %v2487_v22  ;;  %v701_v47 = vrot.slane %v614_v31, %v2487_v22  ;;  %v721_v48 = vrot.slane %v670_v25, %v2487_v22 }
  0xf9   :  { %v697_v49 = vrot.slane %v631_v40, %v2487_v22  ;;  %v705_v50 = vrot.slane %v628_v10, %v2487_v22  ;;  %v632_v51 = vcombine.high %v628_v10, %v628_v10  ;;  %v709_v23 = vrot.slane %v630_v38, %v2487_v22 }
  0xfa   :  { %v763_v20 = vadd.f32 %v689_v42, %v573_v16  ;;  %v764_v53 = vadd.f32 %v693_v45, %v573_v16  ;;  %v766_v54 = vadd.f32 %v701_v47, %v573_v16  ;;  %v2704_v55 = vadd.f32 %v2100_v35, %v721_v48 }
  0xfb   :  { %v765_v57 = vadd.f32 %v697_v49, %v573_v16  ;;  %v767_v58 = vadd.f32 %v705_v50, %v573_v16  ;;  %v713_v59 = vrot.slane %v632_v51, %v2487_v22  ;;  %v2707_v39 = vadd.f32 %v709_v23, %v573_v16 }
  0xfc   :  { %v2709_v21 = vadd.f32 %v2100_v35, %v717_v27  ;;  %v762_v60 = vadd.f32 %v685_v41, %v573_v16  ;;  %v729_v61 = vrot.slane %v680_v34, %v2487_v22  ;;  %v725_v62 = vrot.slane %v678_v26, %v2487_v22 }
  0xfd   :  { %v769_v63 = vadd.f32 %v713_v59, %v573_v16  ;;  %v737_v43 = vrot.slane %v677_v33, %v2487_v22  ;;  %v733_v1 = vrot.slane %v663_v2, %v2487_v22  ;;  %v681_v4 = vcombine.high %v677_v33, %v677_v33 }
  0xfe   :  { %v2715_v56 = vadd.f32 %v2100_v35, %v729_v61  ;;  %v2717_v30 = vadd.f32 %v2100_v35, %v725_v62  ;;  %v741_v46 = vrot.slane %v679_v12, %v2487_v22  ;;  %v2741_v15 = vrot.slane %v2732_v9, %v896_v11 }
  0xff   :  { %v2720_v0 = vadd.f32 %v2100_v35, %v737_v43  ;;  %v2722_v5 = vadd.f32 %v2100_v35, %v733_v1  ;;  %v745_v29 = vrot.slane %v681_v4, %v2487_v22 }
 0x100   :  { %v2725_v6 = vadd.f32 %v2100_v35, %v741_v46 }
 0x101   :  { %v2727_v7 = vadd.f32 %v2100_v35, %v745_v29 }
 0x116   :  { %v781_v13 = vpop.permute.xlu0 %780 }
 0x117   :  { %v862_v14 = vmul.f32 %v2736_v36, %v781_v13 }
 0x119   :  { %v878_v16 = vadd.f32 %v862_v14, %v762_v60 }
 0x11b   :  { %v898_v35 = vadd.f32 %v2741_v15, %v878_v16 }
 0x11d   :  { %v1964_v17 = vmul.f32 -1.442695, %v898_v35 }
 0x11e   :  { %v786_v18 = vpop.permute.xlu1 %785 }
 0x11f   :  { %v863_v52 = vmul.f32 %v2736_v36, %v786_v18  ;;  %2249 = vpow2.f32 %v1964_v17 }
 0x121   :  { %v879_v44 = vadd.f32 %v863_v52, %v763_v20 }
 0x123   :  { %v2746_v3 = vadd.f32 %v2741_v15, %v879_v44 }
 0x124   :  { %v791_v19 = vpop.permute.xlu1 %790 }
 0x125   :  { %v1965_v24 = vmul.f32 -1.442695, %v2746_v3  ;;  %v864_v2 = vmul.f32 %v2736_v36, %v791_v19 }
 0x127   :  { %2251 = vpow2.f32 %v1965_v24  ;;  %v880_v25 = vadd.f32 %v864_v2, %v764_v53 }
 0x128   :  { %v796_v26 = vpop.permute.xlu0 %795  ;;  %v801_v27 = vpop.permute.xlu1 %800 }
 0x129   :  { %v2250_v28 = vpop.eup %2249  ;;  %v2751_v31 = vadd.f32 %v2741_v15, %v880_v25  ;;  %v865_v32 = vmul.f32 %v2736_v36, %v796_v26  ;;  %v866_v33 = vmul.f32 %v2736_v36, %v801_v27 }
 0x12a   :  { %v962_v12 = vadd.f32 1.0, %v2250_v28 }
 0x12b   :  { %v1966_v34 = vmul.f32 -1.442695, %v2751_v31  ;;  %v881_v37 = vadd.f32 %v865_v32, %v765_v57  ;;  %v882_v10 = vadd.f32 %v866_v33, %v766_v54 }
 0x12c   :  { %v806_v38 = vpop.permute.xlu0 %805  ;;  %2253 = vrcp.f32 %v962_v12 }
 0x12d   :  { %2255 = vpow2.f32 %v1966_v34  ;;  %v2757_v40 = vadd.f32 %v2741_v15, %v881_v37  ;;  %v2760_v41 = vadd.f32 %v2741_v15, %v882_v10  ;;  %v867_v42 = vmul.f32 %v2736_v36, %v806_v38 }
 0x12f   :  { %v1967_v45 = vmul.f32 -1.442695, %v2757_v40  ;;  %v1968_v47 = vmul.f32 -1.442695, %v2760_v41  ;;  %v883_v48 = vadd.f32 %v867_v42, %v767_v58 }
 0x130   :  { %v816_v49 = vpop.permute.xlu0 %815  ;;  %v811_v50 = vpop.permute.xlu1 %810 }
 0x131   :  { %v2252_v51 = vpop.eup %2251  ;;  %2257 = vpow2.f32 %v1967_v45  ;;  %v2766_v23 = vadd.f32 %v2741_v15, %v883_v48  ;;  %v869_v20 = vmul.f32 %v2736_v36, %v816_v49  ;;  %v868_v53 = vmul.f32 %v2736_v36, %v811_v50 }
 0x132   :  { %v963_v54 = vadd.f32 1.0, %v2252_v51  ;;  %2259 = vpow2.f32 %v1968_v47 }
 0x133   :  { %v1969_v57 = vmul.f32 -1.442695, %v2766_v23  ;;  %v885_v59 = vadd.f32 %v869_v20, %v769_v63  ;;  %v884_v60 = vadd.f32 %v868_v53, %v2707_v39 }
 0x134   :  { %2261 = vrcp.f32 %v963_v54 }
 0x135   :  { %2263 = vpow2.f32 %v1969_v57  ;;  %v2773_v58 = vadd.f32 %v2741_v15, %v885_v59  ;;  %v2776_v61 = vadd.f32 %v2741_v15, %v884_v60 }
 0x136   :  { %v2254_v62 = vpop.eup %2253 }
 0x137   :  { %v2256_v43 = vpop.eup %2255  ;;  %v1971_v1 = vmul.f32 -1.442695, %v2773_v58  ;;  %v1970_v4 = vmul.f32 -1.442695, %v2776_v61  ;;  %v1010_v46 = vmul.f32 %v2254_v62, %v898_v35 }
 0x138   :  { %v964_v29 = vadd.f32 1.0, %v2256_v43  ;;  %v826_v11 = vpop.permute.xlu0 %825  ;;  %v821_v63 = vpop.permute.xlu1 %820 }
 0x139   :  { %2265 = vpow2.f32 %v1971_v1  ;;  %v871_v39 = vmul.f32 %v2736_v36, %v826_v11  ;;  %v870_v13 = vmul.f32 %v2736_v36, %v821_v63  ;;  %2109 = vmatprep.mubr.msk.f32.mxu0 %vm425_vm0, %v1010_v46 }
 0x13a   :  { %2267 = vrcp.f32 %v964_v29 }
 0x13b   :  { %v2258_v14 = vpop.eup %2257  ;;  %2269 = vpow2.f32 %v1970_v4  ;;  %v887_v16 = vadd.f32 %v871_v39, %v2704_v55  ;;  %v886_v17 = vadd.f32 %v870_v13, %v2709_v21 }
 0x13c   :  { %v2260_v18 = vpop.eup %2259  ;;  %v965_v52 = vadd.f32 1.0, %v2258_v14 }
 0x13d   :  { %v966_v35 = vadd.f32 1.0, %v2260_v18  ;;  %v2786_v44 = vadd.f32 %v2741_v15, %v887_v16  ;;  %v2789_v19 = vadd.f32 %v2741_v15, %v886_v17 }
 0x13e   :  { %v2262_v24 = vpop.eup %2261  ;;  %2271 = vrcp.f32 %v965_v52 }
 0x13f   :  { %v2264_v2 = vpop.eup %2263  ;;  %v1011_v25 = vmul.f32 %v2262_v24, %v2746_v3  ;;  %2273 = vrcp.f32 %v966_v35  ;;  %v1973_v26 = vmul.f32 -1.442695, %v2786_v44  ;;  %v1972_v55 = vmul.f32 -1.442695, %v2789_v19 }
 0x140   :  { %v967_v21 = vadd.f32 1.0, %v2264_v2  ;;  %v836_v27 = vpop.permute.xlu0 %835  ;;  %v831_v28 = vpop.permute.xlu1 %830 }
 0x141   :  { %2275 = vpow2.f32 %v1973_v26  ;;  %v873_v32 = vmul.f32 %v2736_v36, %v836_v27  ;;  %v872_v33 = vmul.f32 %v2736_v36, %v831_v28  ;;  %2110 = vmatmul.mubr.msk.f32.vlgmr.msra.gmra.mrb[2].mxu0 %vm425_vm0, %v1011_v25 }
 0x142   :  { %2277 = vrcp.f32 %v967_v21 }
 0x143   :  { %v2266_v12 = vpop.eup %2265  ;;  %2279 = vpow2.f32 %v1972_v55  ;;  %v889_v3 = vadd.f32 %v873_v32, %v2715_v56  ;;  %v888_v34 = vadd.f32 %v872_v33, %v2717_v30 }
 0x144   :  { %v2268_v37 = vpop.eup %2267  ;;  %v969_v10 = vadd.f32 1.0, %v2266_v12 }
 0x145   :  { %v2270_v38 = vpop.eup %2269  ;;  %v1012_v42 = vmul.f32 %v2268_v37, %v2751_v31  ;;  %v2801_v45 = vadd.f32 %v2741_v15, %v889_v3  ;;  %v2804_v47 = vadd.f32 %v2741_v15, %v888_v34 }
 0x146   :  { %2281 = vrcp.f32 %v969_v10  ;;  %v968_v48 = vadd.f32 1.0, %v2270_v38 }
 0x147   :  { %v1975_v49 = vmul.f32 -1.442695, %v2801_v45  ;;  %v1974_v50 = vmul.f32 -1.442695, %v2804_v47  ;;  %2112 = vmatprep.mubr.msk.f32.mxu0 %vm425_vm0, %v1012_v42 }
 0x148   :  { %v2272_v56 = vpop.eup %2271  ;;  %2283 = vrcp.f32 %v968_v48  ;;  %v846_v30 = vpop.permute.xlu0 %845 }
 0x149   :  { %v841_v51 = vpop.permute.xlu1 %840  ;;  %v2274_v20 = vpop.eup %2273  ;;  %v1013_v31 = vmul.f32 %v2272_v56, %v2757_v40  ;;  %2285 = vpow2.f32 %v1975_v49  ;;  %v875_v53 = vmul.f32 %v2736_v36, %v846_v30  ;;  %v55_v30 = vld [vmem:[%s3075_s4 + $0x80] sm:$0xff] }
 0x14a   :  { %v874_v54 = vmul.f32 %v2736_v36, %v841_v51  ;;  %v1014_v57 = vmul.f32 %v2274_v20, %v2760_v41  ;;  %2287 = vpow2.f32 %v1974_v50  ;;  %v56_v51 = vld [vmem:[%s3075_s4 + $0x88] sm:$0xff] }
 0x14b   :  { %v2276_v59 = vpop.eup %2275  ;;  %v891_v60 = vadd.f32 %v875_v53, %v2720_v0  ;;  %2113 = vmatmul.mubr.msk.f32.gmra.mrb[4].mxu0 %vm425_vm0, %v1013_v31  ;;  %v2201_v20 = vpack.c.bf16 %v56_v51, %v55_v30  ;;  %v57_v31 = vld [vmem:[%s3075_s4 + $0x90] sm:$0xff]  ;;  %v58_v53 = vld [vmem:[%s3075_s4 + $0x98] sm:$0xff] }
 0x14c   :  { %v890_v62 = vadd.f32 %v874_v54, %v2722_v5  ;;  %v2278_v43 = vpop.eup %2277  ;;  %v971_v1 = vadd.f32 1.0, %v2276_v59  ;;  %2115 = vmatprep.mubr.msk.f32.mxu0 %vm425_vm0, %v1014_v57  ;;  %v51_v54 = vld [vmem:[%s3075_s4 + $0x60] sm:$0xff]  ;;  %v2205_v57 = vpack.c.bf16 %v58_v53, %v57_v31  ;;  %v52_v59 = vld [vmem:[%s3075_s4 + $0x68] sm:$0xff] }
 0x14d   :  { %v2280_v40 = vpop.eup %2279  ;;  %v1015_v4 = vmul.f32 %v2278_v43, %v2766_v23  ;;  %v911_v46 = vadd.f32 %v2741_v15, %v891_v60  ;;  %2202 = vmatprep.subr.bf16.mxu1 %v2201_v20  ;;  %v2861_v60 = vpack.c.bf16 %v52_v59, %v51_v54 }
 0x14e   :  { %v910_v29 = vadd.f32 %v2741_v15, %v890_v62  ;;  %2289 = vrcp.f32 %v971_v1  ;;  %v970_v41 = vadd.f32 1.0, %v2280_v40  ;;  %2204 = vmatpush3.bf16.msra.mxu1 %v2201_v20  ;;  %v1028_v62 = vsub.s32 2, %v2460_v8 }
 0x14f   :  { %v1977_v11 = vmul.f32 -1.442695, %v911_v46  ;;  %2116 = vmatmul.mubr.msk.f32.gmra.mrb[6].mxu0 %vm425_vm0, %v1015_v4  ;;  %2206 = vmatprep.subr.bf16.mxu1 %v2205_v57 }
 0x150   :  { %v1976_v63 = vmul.f32 -1.442695, %v910_v29  ;;  %v2282_v0 = vpop.eup %2281  ;;  %2291 = vrcp.f32 %v970_v41  ;;  %v856_v5 = vpop.permute.xlu0 %855  ;;  %v2866_v43 = vrot.slane %v2732_v9, %v1028_v62 }
 0x151   :  { %v851_v39 = vpop.permute.xlu1 %850  ;;  %2293 = vpow2.f32 %v1977_v11  ;;  %v877_v13 = vmul.f32 %v2736_v36, %v856_v5  ;;  %v1017_v16 = vmul.f32 %v2282_v0, %v2773_v58 }
 0x152   :  { %v876_v14 = vmul.f32 %v2736_v36, %v851_v39  ;;  %v2284_v23 = vpop.eup %2283  ;;  %2295 = vpow2.f32 %v1976_v63  ;;  %2208 = vmatpush3.bf16.msra.mxu1 %v2205_v57 }
 0x153   :  { %v2286_v17 = vpop.eup %2285  ;;  %v1016_v18 = vmul.f32 %v2284_v23, %v2776_v61  ;;  %v893_v52 = vadd.f32 %v877_v13, %v2727_v7  ;;  %2210 = vmatprep.subr.bf16.mxu1 %v2861_v60 }
 0x154   :  { %v892_v35 = vadd.f32 %v876_v14, %v2725_v6  ;;  %v2288_v24 = vpop.eup %2287  ;;  %v973_v2 = vadd.f32 1.0, %v2286_v17 }
 0x155   :  { %v972_v25 = vadd.f32 1.0, %v2288_v24  ;;  %v913_v26 = vadd.f32 %v2741_v15, %v893_v52  ;;  %2118 = vmatprep.mubr.msk.f32.mxu0 %vm425_vm0, %v1016_v18 }
 0x156   :  { %v912_v55 = vadd.f32 %v2741_v15, %v892_v35  ;;  %2297 = vrcp.f32 %v973_v2  ;;  %2119 = vmatmul.mubr.msk.f32.gmra.mrb[8].mxu0 %vm425_vm0, %v1017_v16 }
 0x157   :  { %2299 = vrcp.f32 %v972_v25  ;;  %v1979_v36 = vmul.f32 -1.442695, %v913_v26 }
 0x158   :  { %v1978_v58 = vmul.f32 -1.442695, %v912_v55  ;;  %v2290_v61 = vpop.eup %2289 }
 0x159   :  { %2301 = vpow2.f32 %v1979_v36  ;;  %v1019_v6 = vmul.f32 %v2290_v61, %v2786_v44 }
 0x15a   :  { %v2292_v7 = vpop.eup %2291  ;;  %2303 = vpow2.f32 %v1978_v58 }
 0x15b   :  { %v2294_v21 = vpop.eup %2293  ;;  %v1018_v27 = vmul.f32 %v2292_v7, %v2789_v19 }
 0x15c   :  { %v2296_v28 = vpop.eup %2295  ;;  %v975_v32 = vadd.f32 1.0, %v2294_v21 }
 0x15d   :  { %v974_v15 = vadd.f32 1.0, %v2296_v28  ;;  %2121 = vmatprep.mubr.msk.f32.mxu0 %vm425_vm0, %v1018_v27 }
 0x15e   :  { %2305 = vrcp.f32 %v975_v32  ;;  %2122 = vmatmul.mubr.msk.f32.gmra.mrb[10].mxu0 %vm425_vm0, %v1019_v6 }
 0x15f   :  { %2307 = vrcp.f32 %v974_v15 }
 0x160   :  { %v2298_v33 = vpop.eup %2297 }
 0x161   :  { %v2300_v12 = vpop.eup %2299  ;;  %v1021_v3 = vmul.f32 %v2298_v33, %v2801_v45 }
 0x162   :  { %v1020_v34 = vmul.f32 %v2300_v12, %v2804_v47 }
 0x163   :  { %v2302_v44 = vpop.eup %2301 }
 0x164   :  { %v2304_v37 = vpop.eup %2303  ;;  %v977_v10 = vadd.f32 1.0, %v2302_v44  ;;  %2124 = vmatprep.mubr.msk.f32.mxu0 %vm425_vm0, %v1020_v34 }
 0x165   :  { %v976_v19 = vadd.f32 1.0, %v2304_v37  ;;  %2125 = vmatmul.mubr.msk.f32.gmra.mrb[12].mxu0 %vm425_vm0, %v1021_v3  ;;  %v2894_v3 = vpop.permute.xlu1 %1337 }
 0x166   :  { %2309 = vrcp.f32 %v977_v10 }
 0x167   :  { %2311 = vrcp.f32 %v976_v19 }
 0x168   :  { %v2306_v38 = vpop.eup %2305 }
 0x169   :  { %v2308_v42 = vpop.eup %2307  ;;  %v1023_v48 = vmul.f32 %v2306_v38, %v911_v46 }
 0x16a   :  { %v1022_v49 = vmul.f32 %v2308_v42, %v910_v29 }
 0x16c   :  { %2127 = vmatprep.mubr.msk.f32.mxu0 %vm425_vm0, %v1022_v49 }
 0x16d   :  { %2128 = vmatmul.mubr.msk.f32.gmra.mrb[14].mxu0 %vm425_vm0, %v1023_v48 }
 0x170   :  { %v2310_v45 = vpop.eup %2309 }
 0x171   :  { %v2312_v47 = vpop.eup %2311  ;;  %v1025_v50 = vmul.f32 %v2310_v45, %v913_v26 }
 0x172   :  { %v1024_v56 = vmul.f32 %v2312_v47, %v912_v55 }
 0x174   :  { %2130 = vmatprep.mubr.msk.f32.mxu0 %vm425_vm0, %v1024_v56 }
 0x175   :  { %2131 = vmatmul.mubr.msk.f32.gmra.mrb[16].mxu0 %vm425_vm0, %v1025_v50 }
 0x214   :  { %v2111_v1 = vpop.f32.mrb[2].mxu0 }
 0x215   :  { %v1150_v40 = vadd.f32 %v2111_v1, %v2866_v43  ;;  %v1144_v4 = vpop.f32.mrb[3].mxu0 }
 0x216   :  { %v1145_v46 = vadd.f32 %v1144_v4, %v2866_v43 }
 0x217   :  { %v1997_v29 = vmul.f32 -1.442695, %v1150_v40 }
 0x218   :  { %v1996_v41 = vmul.f32 -1.442695, %v1145_v46 }
 0x219   :  { %2313 = vpow2.f32 %v1997_v29 }
 0x21a   :  { %2315 = vpow2.f32 %v1996_v41 }
 0x21e   :  { %v2114_v11 = vpop.f32.mrb[4].mxu0 }
 0x21f   :  { %v2871_v63 = vadd.f32 %v2114_v11, %v2866_v43  ;;  %v1154_v0 = vpop.f32.mrb[5].mxu0 }
 0x220   :  { %v2874_v5 = vadd.f32 %v1154_v0, %v2866_v43 }
 0x221   :  { %v1999_v9 = vmul.f32 -1.442695, %v2871_v63 }
 0x222   :  { %v1998_v39 = vmul.f32 -1.442695, %v2874_v5  ;;  %v2117_v13 = vpop.f32.mrb[6].mxu0 }
 0x223   :  { %v2314_v14 = vpop.eup %2313  ;;  %2317 = vpow2.f32 %v1999_v9  ;;  %v2879_v23 = vadd.f32 %v2117_v13, %v2866_v43  ;;  %v1164_v16 = vpop.f32.mrb[7].mxu0 }
 0x224   :  { %v2316_v17 = vpop.eup %2315  ;;  %v1272_v18 = vadd.f32 1.0, %v2314_v14  ;;  %2319 = vpow2.f32 %v1998_v39  ;;  %v2882_v52 = vadd.f32 %v1164_v16, %v2866_v43 }
 0x225   :  { %v1271_v35 = vadd.f32 1.0, %v2316_v17  ;;  %v2001_v24 = vmul.f32 -1.442695, %v2879_v23 }
 0x226   :  { %2321 = vrcp.f32 %v1272_v18  ;;  %v2000_v2 = vmul.f32 -1.442695, %v2882_v52 }
 0x227   :  { %2323 = vrcp.f32 %v1271_v35 }
 0x228   :  { %2325 = vpow2.f32 %v2001_v24 }
 0x229   :  { %2327 = vpow2.f32 %v2000_v2  ;;  %v2120_v25 = vpop.f32.mrb[8].mxu0 }
 0x22a   :  { %v2887_v26 = vadd.f32 %v2120_v25, %v2866_v43  ;;  %v1174_v55 = vpop.f32.mrb[9].mxu0 }
 0x22b   :  { %v2890_v36 = vadd.f32 %v1174_v55, %v2866_v43 }
 0x22c   :  { %v2003_v58 = vmul.f32 -1.442695, %v2887_v26 }
 0x22d   :  { %v2318_v61 = vpop.eup %2317  ;;  %v2002_v7 = vmul.f32 -1.442695, %v2890_v36 }
 0x22e   :  { %v2320_v6 = vpop.eup %2319  ;;  %v1274_v21 = vadd.f32 1.0, %v2318_v61  ;;  %2329 = vpow2.f32 %v2003_v58 }
 0x22f   :  { %v1273_v27 = vadd.f32 1.0, %v2320_v6  ;;  %2331 = vpow2.f32 %v2002_v7 }
 0x230   :  { %v2322_v28 = vpop.eup %2321  ;;  %2333 = vrcp.f32 %v1274_v21 }
 0x231   :  { %v2324_v32 = vpop.eup %2323  ;;  %v1320_v15 = vmul.f32 %v2322_v28, %v1150_v40  ;;  %2335 = vrcp.f32 %v1273_v27  ;;  %v2123_v33 = vpop.f32.mrb[10].mxu0 }
 0x232   :  { %v2326_v12 = vpop.eup %2325  ;;  %v1319_v34 = vmul.f32 %v2324_v32, %v1145_v46  ;;  %v2897_v44 = vadd.f32 %v2123_v33, %v2866_v43  ;;  %v1184_v37 = vpop.f32.mrb[11].mxu0 }
 0x233   :  { %v2328_v10 = vpop.eup %2327  ;;  %v1346_v19 = vmul.f32 %v2894_v3, %v1320_v15  ;;  %v1276_v38 = vadd.f32 1.0, %v2326_v12  ;;  %v2901_v42 = vadd.f32 %v1184_v37, %v2866_v43 }
 0x234   :  { %v1345_v48 = vmul.f32 %v2894_v3, %v1319_v34  ;;  %v1275_v49 = vadd.f32 1.0, %v2328_v10  ;;  %v2005_v45 = vmul.f32 -1.442695, %v2897_v44 }
 0x235   :  { %v1368_v47 = vsel %vm425_vm0, %v1346_v19, 0.0  ;;  %2337 = vrcp.f32 %v1276_v38  ;;  %v2004_v50 = vmul.f32 -1.442695, %v2901_v42 }
 0x236   :  { %v1369_v56 = vrot.slane %v1368_v47, 4  ;;  %v1361_v30 = vsel %vm425_vm0, %v1345_v48, 0.0  ;;  %2339 = vrcp.f32 %v1275_v49 }
 0x237   :  { %v1362_v51 = vrot.slane %v1361_v30, 4  ;;  %2341 = vpow2.f32 %v2005_v45 }
 0x238   :  { %v2330_v20 = vpop.eup %2329  ;;  %v1370_v31 = vadd.f32 %v1369_v56, %v1368_v47  ;;  %2343 = vpow2.f32 %v2004_v50  ;;  %v2126_v53 = vpop.f32.mrb[12].mxu0 }
 0x239   :  { %v2332_v54 = vpop.eup %2331  ;;  %v1363_v57 = vadd.f32 %v1362_v51, %v1361_v30  ;;  %v1278_v59 = vadd.f32 1.0, %v2330_v20  ;;  %v2909_v62 = vadd.f32 %v2126_v53, %v2866_v43  ;;  %v1194_v1 = vpop.f32.mrb[13].mxu0 }
 0x23a   :  { %v2334_v40 = vpop.eup %2333  ;;  %v1371_v4 = vrot.slane %v1370_v31, 2  ;;  %v1277_v46 = vadd.f32 1.0, %v2332_v54  ;;  %v2912_v29 = vadd.f32 %v1194_v1, %v2866_v43 }
 0x23b   :  { %v2336_v41 = vpop.eup %2335  ;;  %v1364_v11 = vrot.slane %v1363_v57, 2  ;;  %v1322_v0 = vmul.f32 %v2334_v40, %v2871_v63  ;;  %2345 = vrcp.f32 %v1278_v59  ;;  %v2007_v9 = vmul.f32 -1.442695, %v2909_v62 }
 0x23c   :  { %v1372_v39 = vadd.f32 %v1371_v4, %v1370_v31  ;;  %v1321_v13 = vmul.f32 %v2336_v41, %v2874_v5  ;;  %2347 = vrcp.f32 %v1277_v46  ;;  %v2006_v14 = vmul.f32 -1.442695, %v2912_v29 }
 0x23d   :  { %v1365_v16 = vadd.f32 %v1364_v11, %v1363_v57  ;;  %v1348_v17 = vmul.f32 %v2894_v3, %v1322_v0  ;;  %2349 = vpow2.f32 %v2007_v9 }
 0x23e   :  { %v1373_v18 = vrot.slane %v1372_v39, 1  ;;  %v1347_v35 = vmul.f32 %v2894_v3, %v1321_v13  ;;  %2351 = vpow2.f32 %v2006_v14 }
 0x23f   :  { %v2338_v24 = vpop.eup %2337  ;;  %v1366_v2 = vrot.slane %v1365_v16, 1  ;;  %v1382_v63 = vsel %vm425_vm0, %v1348_v17, 0.0 }
 0x240   :  { %v2340_v25 = vpop.eup %2339  ;;  %v1374_v55 = vadd.f32 %v1373_v18, %v1372_v39  ;;  %v1383_v58 = vrot.slane %v1382_v63, 4  ;;  %v1375_v5 = vsel %vm425_vm0, %v1347_v35, 0.0  ;;  %v1324_v61 = vmul.f32 %v2338_v24, %v2879_v23  ;;  %v2129_v7 = vpop.f32.mrb[14].mxu0 }
 0x241   :  { %v2342_v6 = vpop.eup %2341  ;;  %v1367_v21 = vadd.f32 %v1366_v2, %v1365_v16  ;;  %v1376_v27 = vrot.slane %v1375_v5, 4  ;;  %v1323_v28 = vmul.f32 %v2340_v25, %v2882_v52  ;;  %v2925_v32 = vadd.f32 %v2129_v7, %v2866_v43  ;;  %v1204_v15 = vpop.f32.mrb[15].mxu0 }
 0x242   :  { %v2344_v33 = vpop.eup %2343  ;;  %v1384_v12 = vadd.f32 %v1383_v58, %v1382_v63  ;;  %v1350_v34 = vmul.f32 %v2894_v3, %v1324_v61  ;;  %v1280_v37 = vadd.f32 1.0, %v2342_v6  ;;  %v2929_v10 = vadd.f32 %v1204_v15, %v2866_v43 }
 0x243   :  { %v1490_v23 = vsel %vm1489_vm2, %v1374_v55, %v1367_v21  ;;  %v1377_v19 = vadd.f32 %v1376_v27, %v1375_v5  ;;  %v1349_v38 = vmul.f32 %v2894_v3, %v1323_v28  ;;  %v1279_v48 = vadd.f32 1.0, %v2344_v33 }
 0x244   :  { %v1385_v52 = vrot.slane %v1384_v12, 2  ;;  %v1396_v49 = vsel %vm425_vm0, %v1350_v34, 0.0  ;;  %2353 = vrcp.f32 %v1280_v37  ;;  %v2009_v45 = vmul.f32 -1.442695, %v2925_v32 }
 0x245   :  { %v2346_v47 = vpop.eup %2345  ;;  %v1378_v50 = vrot.slane %v1377_v19, 2  ;;  %v1397_v56 = vrot.slane %v1396_v49, 4  ;;  %v1389_v30 = vsel %vm425_vm0, %v1349_v38, 0.0  ;;  %2355 = vrcp.f32 %v1279_v48  ;;  %v2953_v38 = vpop.permute.xlu0 %1342 }
 0x246   :  { %v2348_v51 = vpop.eup %2347  ;;  %v1386_v20 = vadd.f32 %v1385_v52, %v1384_v12  ;;  %v1390_v31 = vrot.slane %v1389_v30, 4  ;;  %v1326_v53 = vmul.f32 %v2346_v47, %v2887_v26  ;;  %2357 = vpow2.f32 %v2009_v45 }
 0x247   :  { %v2350_v54 = vpop.eup %2349  ;;  %v1379_v57 = vadd.f32 %v1378_v50, %v1377_v19  ;;  %v1398_v59 = vadd.f32 %v1397_v56, %v1396_v49  ;;  %v1325_v1 = vmul.f32 %v2348_v51, %v2890_v36  ;;  %v2008_v11 = vmul.f32 -1.442695, %v2929_v10 }
 0x248   :  { %v2352_v40 = vpop.eup %2351  ;;  %v1391_v4 = vadd.f32 %v1390_v31, %v1389_v30  ;;  %v1352_v46 = vmul.f32 %v2894_v3, %v1326_v53  ;;  %v1282_v41 = vadd.f32 1.0, %v2350_v54  ;;  %v2132_v0 = vpop.f32.mrb[16].mxu0  ;;  %v1387_v16 = vrot.slane %v1386_v20, 1 }
 0x249   :  { %v1380_v9 = vrot.slane %v1379_v57, 1  ;;  %v1399_v39 = vrot.slane %v1398_v59, 2  ;;  %v1351_v26 = vmul.f32 %v2894_v3, %v1325_v1  ;;  %v1281_v13 = vadd.f32 1.0, %v2352_v40  ;;  %v1214_v14 = vpop.f32.mrb[17].mxu0 }
 0x24a   :  { %v1392_v17 = vrot.slane %v1391_v4, 2  ;;  %v1410_v36 = vsel %vm425_vm0, %v1352_v46, 0.0  ;;  %2359 = vrcp.f32 %v1282_v41  ;;  %v2944_v55 = vadd.f32 %v2132_v0, %v2866_v43 }
 0x24b   :  { %v1381_v18 = vadd.f32 %v1380_v9, %v1379_v57  ;;  %v1400_v35 = vadd.f32 %v1399_v39, %v1398_v59  ;;  %v1411_v24 = vrot.slane %v1410_v36, 4  ;;  %v1403_v2 = vsel %vm425_vm0, %v1351_v26, 0.0 }
 0x24c   :  { %v1393_v63 = vadd.f32 %v1392_v17, %v1391_v4  ;;  %v1404_v25 = vrot.slane %v1403_v2, 4  ;;  %2361 = vrcp.f32 %v1281_v13  ;;  %v2947_v61 = vadd.f32 %v1214_v14, %v2866_v43 }
 0x24d   :  { %v1401_v58 = vrot.slane %v1400_v35, 1  ;;  %v1412_v5 = vadd.f32 %v1411_v24, %v1410_v36  ;;  %2363 = vpow2.f32 %v2008_v11  ;;  %v2011_v27 = vmul.f32 -1.442695, %v2944_v55 }
 0x24e   :  { %v2354_v7 = vpop.eup %2353  ;;  %v1394_v6 = vrot.slane %v1393_v63, 1  ;;  %v1405_v21 = vadd.f32 %v1404_v25, %v1403_v2  ;;  %v1492_v28 = vsel %vm1491_vm3, %v1381_v18, %v1490_v23  ;;  %v1388_v33 = vadd.f32 %v1387_v16, %v1386_v20 }
 0x24f   :  { %v2356_v15 = vpop.eup %2355  ;;  %v1413_v12 = vrot.slane %v1412_v5, 2  ;;  %v1328_v34 = vmul.f32 %v2354_v7, %v2897_v44  ;;  %v2010_v37 = vmul.f32 -1.442695, %v2947_v61  ;;  %2365 = vpow2.f32 %v2011_v27 }
 0x250   :  { %v2358_v19 = vpop.eup %2357  ;;  %v1395_v48 = vadd.f32 %v1394_v6, %v1393_v63  ;;  %v1406_v43 = vrot.slane %v1405_v21, 2  ;;  %v1327_v52 = vmul.f32 %v2356_v15, %v2901_v42  ;;  %v1402_v23 = vadd.f32 %v1401_v58, %v1400_v35 }
 0x251   :  { %v1414_v49 = vadd.f32 %v1413_v12, %v1412_v5  ;;  %v1354_v45 = vmul.f32 %v2953_v38, %v1328_v34  ;;  %v1284_v47 = vadd.f32 1.0, %v2358_v19  ;;  %2367 = vpow2.f32 %v2010_v37 }
 0x252   :  { %v1407_v50 = vadd.f32 %v1406_v43, %v1405_v21  ;;  %v1353_v56 = vmul.f32 %v2953_v38, %v1327_v52  ;;  %v1494_v44 = vsel %vm1493_vm4, %v1388_v33, %v1492_v28 }
 0x253   :  { %v1424_v30 = vsel %vm425_vm0, %v1354_v45, 0.0  ;;  %2369 = vrcp.f32 %v1284_v47  ;;  %v1415_v51 = vrot.slane %v1414_v49, 1  ;;  %v1496_v20 = vsel %vm1495_vm5, %v1395_v48, %v1494_v44 }
 0x254   :  { %v2360_v31 = vpop.eup %2359  ;;  %v1408_v42 = vrot.slane %v1407_v50, 1  ;;  %v1425_v53 = vrot.slane %v1424_v30, 4  ;;  %v1417_v54 = vsel %vm425_vm0, %v1353_v56, 0.0  ;;  %v1498_v57 = vsel %vm1497_vm6, %v1402_v23, %v1496_v20 }
 0x255   :  { %v1418_v59 = vrot.slane %v1417_v54, 4  ;;  %v1330_v1 = vmul.f32 %v2360_v31, %v2909_v62  ;;  %v1416_v39 = vadd.f32 %v1415_v51, %v1414_v49 }
 0x256   :  { %v2362_v40 = vpop.eup %2361  ;;  %v1426_v4 = vadd.f32 %v1425_v53, %v1424_v30  ;;  %v1409_v46 = vadd.f32 %v1408_v42, %v1407_v50 }
 0x257   :  { %v2364_v41 = vpop.eup %2363  ;;  %v1419_v11 = vadd.f32 %v1418_v59, %v1417_v54  ;;  %v1356_v0 = vmul.f32 %v2953_v38, %v1330_v1  ;;  %v1329_v9 = vmul.f32 %v2362_v40, %v2912_v29 }
 0x258   :  { %v1427_v26 = vrot.slane %v1426_v4, 2  ;;  %v1283_v13 = vadd.f32 1.0, %v2364_v41  ;;  %v1500_v14 = vsel %vm1499_vm7, %v1409_v46, %v1498_v57 }
 0x259   :  { %v1420_v16 = vrot.slane %v1419_v11, 2  ;;  %v1438_v17 = vsel %vm425_vm0, %v1356_v0, 0.0  ;;  %v1355_v62 = vmul.f32 %v2953_v38, %v1329_v9  ;;  %v1502_v36 = vsel %vm1501_vm8, %v1416_v39, %v1500_v14  ;;  %v2366_v18 = vpop.eup %2365 }
 0x25a   :  { %v1428_v35 = vadd.f32 %v1427_v26, %v1426_v4  ;;  %v1439_v24 = vrot.slane %v1438_v17, 4  ;;  %2371 = vrcp.f32 %v1283_v13  ;;  %2141 = vmatprep.mubr.msk.f32.mxu1 %vm425_vm0, %v1502_v36  ;;  %v1286_v25 = vadd.f32 1.0, %v2366_v18 }
 0x25b   :  { %v2368_v2 = vpop.eup %2367  ;;  %v1421_v29 = vadd.f32 %v1420_v16, %v1419_v11  ;;  %v1431_v63 = vsel %vm425_vm0, %v1355_v62, 0.0 }
 0x25c   :  { %v1429_v58 = vrot.slane %v1428_v35, 1  ;;  %v1440_v5 = vadd.f32 %v1439_v24, %v1438_v17  ;;  %v1432_v7 = vrot.slane %v1431_v63, 4  ;;  %v1285_v6 = vadd.f32 1.0, %v2368_v2 }
 0x25d   :  { %v2370_v21 = vpop.eup %2369  ;;  %v1422_v27 = vrot.slane %v1421_v29, 1  ;;  %2373 = vrcp.f32 %v1286_v25 }
 0x25e   :  { %v1430_v28 = vadd.f32 %v1429_v58, %v1428_v35  ;;  %v1441_v15 = vrot.slane %v1440_v5, 2  ;;  %v1433_v33 = vadd.f32 %v1432_v7, %v1431_v63  ;;  %v1332_v12 = vmul.f32 %v2370_v21, %v2925_v32  ;;  %v53_v58 = vld [vmem:[%s3075_s4 + $0x70] sm:$0xff] }
 0x25f   :  { %v1423_v34 = vadd.f32 %v1422_v27, %v1421_v29  ;;  %2375 = vrcp.f32 %v1285_v6 }
 0x260   :  { %v1442_v37 = vadd.f32 %v1441_v15, %v1440_v5  ;;  %v1434_v19 = vrot.slane %v1433_v33, 2  ;;  %v1358_v48 = vmul.f32 %v2953_v38, %v1332_v12  ;;  %v54_v5 = vld [vmem:[%s3075_s4 + $0x78] sm:$0xff]  ;;  %v3002_v15 = vld [vmem:[%s3072_s1] sm:$0xff]  ;;  %v60_v12 = vld [vmem:[%s3075_s4 + $0xa8] sm:$0xff] }
 0x261   :  { %v1503_v43 = vsel %vm1489_vm2, %v1430_v28, %v1423_v34  ;;  %v2213_v27 = vpack.c.bf16 %v54_v5, %v53_v58  ;;  %v1919_v58 = vsub.s32 7, %v2460_v8 }
 0x262   :  { %v1435_v52 = vadd.f32 %v1434_v19, %v1433_v33  ;;  %v1452_v49 = vsel %vm425_vm0, %v1358_v48, 0.0  ;;  %v1443_v45 = vrot.slane %v1442_v37, 1  ;;  %v2386_v33 = vld [vmem:[%s3072_s1 + $0x8] sm:$0xff]  ;;  %v62_v19 = vld [vmem:[%s3075_s4 + $0xb8] sm:$0xff] }
 0x263   :  { %v1453_v47 = vrot.slane %v1452_v49, 4 }
 0x264   :  { %v2372_v23 = vpop.eup %2371  ;;  %v1436_v50 = vrot.slane %v1435_v52, 1  ;;  %v1444_v51 = vadd.f32 %v1443_v45, %v1442_v37  ;;  %v61_v37 = vld [vmem:[%s3075_s4 + $0xb0] sm:$0xff] }
 0x265   :  { %v1454_v56 = vadd.f32 %v1453_v47, %v1452_v49  ;;  %v1331_v44 = vmul.f32 %v2372_v23, %v2929_v10  ;;  %v2221_v48 = vpack.c.bf16 %v62_v19, %v61_v37  ;;  %v3026_v49 = vld [vmem:[%s3075_s4 + $0xf0] sm:$0xff] }
 0x266   :  { %v1437_v30 = vadd.f32 %v1436_v50, %v1435_v52  ;;  %v1666_v52 = vsub.s32 3, %v2460_v8 }
 0x267   :  { %v2374_v32 = vpop.eup %2373  ;;  %v1357_v20 = vmul.f32 %v2953_v38, %v1331_v44  ;;  %v1455_v54 = vrot.slane %v1454_v56, 2 }
 0x268   :  { %v1504_v31 = vsel %vm1491_vm3, %v1437_v30, %v1503_v43  ;;  %v1334_v42 = vmul.f32 %v2374_v32, %v2944_v55  ;;  %v2407_v43 = vmov 0.0|0.0   ;;  %v1667_v45 = vrot.slane %v3026_v49, %v1666_v52  ;;  %v1816_v52 = vpop.permute.xlu1 %1815 }
 0x269   :  { %v2376_v53 = vpop.eup %2375  ;;  %v1445_v57 = vsel %vm425_vm0, %v1357_v20, 0.0  ;;  %v1505_v59 = vsel %vm1493_vm4, %v1444_v51, %v1504_v31  ;;  %v1456_v11 = vadd.f32 %v1455_v54, %v1454_v56 }
 0x26a   :  { %v1446_v1 = vrot.slane %v1445_v57, 4  ;;  %v1360_v40 = vmul.f32 %v2953_v38, %v1334_v42  ;;  %v1333_v10 = vmul.f32 %v2376_v53, %v2947_v61  ;;  %v63_v42 = vld [vmem:[%s3075_s4 + $0xc0] sm:$0xff]  ;;  %v64_v53 = vld [vmem:[%s3075_s4 + $0xc8] sm:$0xff] }
 0x26b   :  { %v1457_v14 = vrot.slane %v1456_v11, 1 }
 0x26c   :  { %v1447_v4 = vadd.f32 %v1446_v1, %v1445_v57  ;;  %v1466_v46 = vsel %vm425_vm0, %v1360_v40, 0.0  ;;  %v1359_v41 = vmul.f32 %v2953_v38, %v1333_v10  ;;  %v2226_v1 = vpack.c.bf16 %v64_v53, %v63_v42  ;;  %v65_v10 = vld [vmem:[%s3075_s4 + $0xd0] sm:$0xff] }
 0x26d   :  { %v1467_v0 = vrot.slane %v1466_v46, 4  ;;  %v1458_v35 = vadd.f32 %v1457_v14, %v1456_v11  ;;  %v2409_v11 = vmov 0.0  }
 0x26e   :  { %v1448_v9 = vrot.slane %v1447_v4, 2  ;;  %v1459_v55 = vsel %vm425_vm0, %v1359_v41, 0.0 }
 0x26f   :  { %v1468_v39 = vadd.f32 %v1467_v0, %v1466_v46  ;;  %v1460_v26 = vrot.slane %v1459_v55, 4  ;;  %v2022_v46 = vld [vmem:[%s1958_s18 + $0xe0] sm:$0x1] }
 0x270   :  { %v1449_v13 = vadd.f32 %v1448_v9, %v1447_v4  ;;  %v66_v4 = vld [vmem:[%s3075_s4 + $0xd8] sm:$0xff]  ;;  %v1829_v0 = vrot.slane %v2022_v46, 7  ;;  %v2020_v9 = vld [vmem:[%s1956_s24 + $0xe0] sm:$0x1] }
 0x271   :  { %v1469_v16 = vrot.slane %v1468_v39, 2  ;;  %v1461_v17 = vadd.f32 %v1460_v26, %v1459_v55  ;;  %v2229_v41 = vpack.c.bf16 %v66_v4, %v65_v10 }
 0x272   :  { %v1450_v62 = vrot.slane %v1449_v13, 1  ;;  %v1832_v55 = vsel %vm1831_vm10, %v2020_v9, %v1829_v0 }
 0x273   :  { %v1470_v36 = vadd.f32 %v1469_v16, %v1468_v39  ;;  %v1462_v18 = vrot.slane %v1461_v17, 2  ;;  %v1769_v39 = vsub.s32 4, %v2460_v8 }
 0x274   :  { %v1451_v61 = vadd.f32 %v1450_v62, %v1449_v13 }
 0x275   :  { %v1463_v24 = vadd.f32 %v1462_v18, %v1461_v17  ;;  %v1471_v2 = vrot.slane %v1470_v36, 1  ;;  %v1770_v26 = vrot.slane %v3026_v49, %v1769_v39  ;;  %v1835_v17 = vsub.s32 5, %v2460_v8 }
 0x276   :  { %v1506_v29 = vsel %vm1495_vm5, %v1451_v61, %v1505_v59 }
 0x277   :  { %v1464_v63 = vrot.slane %v1463_v24, 1  ;;  %v1507_v25 = vsel %vm1497_vm6, %v1458_v35, %v1506_v29  ;;  %v1472_v6 = vadd.f32 %v1471_v2, %v1470_v36  ;;  %v1836_v35 = vrot.slane %v3026_v49, %v1835_v17 }
 0x279   :  { %v1465_v7 = vadd.f32 %v1464_v63, %v1463_v24 }
 0x27b   :  { %v1508_v21 = vsel %vm1499_vm7, %v1465_v7, %v1507_v25 }
 0x27c   :  { %v1509_v28 = vsel %vm1501_vm8, %v1472_v6, %v1508_v21 }
 0x27d   :  { %2142 = vmatmul.mubr.msk.f32.vlgmr.msra.gmra.mrb[2].mxu1 %vm425_vm0, %v1509_v28 }
 0x27e   :  { %2212 = vmatpush3.bf16.msra.mxu1 %v2861_v60  ;;  %2152 = vmatprep.mubr.msk.f32.mxu1 %vm425_vm0, %v3002_v15  ;;  %v59_v60 = vld [vmem:[%s3075_s4 + $0xa0] sm:$0xff] }
 0x27f   :  { %2214 = vmatprep.subr.bf16.mxu1 %v2213_v27  ;;  %v2217_v34 = vpack.c.bf16 %v60_v12, %v59_v60 }
 0x282   :  { %2216 = vmatpush3.bf16.msra.mxu1 %v2213_v27 }
 0x283   :  { %2218 = vmatprep.subr.bf16.mxu1 %v2217_v34 }
 0x285   :  { %2153 = vmatmul.mubr.msk.f32.vlgmr.msra.gmra.mrb[2].mxu1 %vm425_vm0, %v2386_v33 }
 0x286   :  { %2220 = vmatpush3.bf16.msra.mxu1 %v2217_v34 }
 0x287   :  { %2222 = vmatprep.subr.bf16.mxu1 %v2221_v48 }
 0x28a   :  { %2224 = vmatpush3.bf16.msra.mxu1 %v2221_v48 }
 0x28b   :  { %2225 = vmatprep.subr.bf16.mxu1 %v2407_v43 }
 0x358   :  { %v2154_v47 = vpop.f32.mrb[2].mxu1 }
 0x359   :  { %v1669_v23 = vadd.f32 %v2154_v47, %v1667_v45  ;;  %v1655_v50 = vpop.f32.mrb[3].mxu1  ;;  %v68_v47 = vld [vmem:[%s3075_s4 + $0xf8] sm:$0xff] }
 0x35a   :  { %v1668_v56 = vadd.f32 %v1667_v45, %v1655_v50 }
 0x35b   :  { %v2017_v44 = vmul.f32 -1.442695, %v1669_v23 }
 0x35c   :  { %v2016_v30 = vmul.f32 -1.442695, %v1668_v56 }
 0x35d   :  { %2377 = vpow2.f32 %v2017_v44 }
 0x35e   :  { %2379 = vpow2.f32 %v2016_v30 }
 0x367   :  { %v2378_v32 = vpop.eup %2377 }
 0x368   :  { %v2380_v51 = vpop.eup %2379  ;;  %v1677_v20 = vadd.f32 1.0, %v2378_v32 }
 0x369   :  { %v1676_v31 = vadd.f32 1.0, %v2380_v51 }
 0x36a   :  { %2381 = vrcp.f32 %v1677_v20 }
 0x36b   :  { %2383 = vrcp.f32 %v1676_v31 }
 0x374   :  { %v2382_v54 = vpop.eup %2381 }
 0x375   :  { %v2384_v57 = vpop.eup %2383  ;;  %v1683_v40 = vmul.f32 %v2382_v54, %v1669_v23  ;;  %v1811_v23 = vpop.permute.xlu0 %1810 }
 0x376   :  { %v1682_v59 = vmul.f32 %v2384_v57, %v1668_v56 }
 0x378   :  { %2163 = vmatprep.mubr.msk.f32.mxu1 %vm425_vm0, %v1682_v59 }
 0x379   :  { %2164 = vmatmul.mubr.msk.f32.vlgmr.msra.gmra.mrb[4].mxu1 %vm425_vm0, %v1683_v40 }
 0x37a   :  { %2227 = vmatpush3.bf16.msra.mxu1 %v2226_v1  ;;  %2174 = vmatprep.mubr.msk.f32.mxu1 %vm2408_vm9, %v2409_v11 }
 0x37b   :  { %2228 = vmatprep.subr.bf16.mxu1 %v2407_v43 }
 0x37e   :  { %2230 = vmatpush3.bf16.msra.mxu1 %v2229_v41 }
 0x381   :  { %2175 = vmatmul.mubr.msk.f32.vlgmr.msra.gmra.mrb[6].mxu1 %vm425_vm0, %v1832_v55 }
 0x44c   :  { %v2165_v13 = vpop.f32.mrb[4].mxu1 }
 0x44d   :  { %v1766_v14 = vadd.f32 %v2386_v33, %v2165_v13  ;;  %v1756_v16 = vpop.f32.mrb[5].mxu1 }
 0x44e   :  { %v1765_v62 = vadd.f32 %v3002_v15, %v1756_v16 }
 0x44f   :  { %v1772_v36 = vadd.f32 %v1770_v26, %v1766_v14 }
 0x450   :  { %v1771_v18 = vadd.f32 %v1770_v26, %v1765_v62 }
 0x451   :  { %v1774_v61 = vmul.f32 %v1772_v36, %v2953_v38  ;;  %v1920_v38 = vrot.slane %v3026_v49, %v1919_v58 }
 0x452   :  { %v1773_v24 = vmul.f32 %v1771_v18, %v2894_v3  ;;  %v1913_v3 = vsub.s32 6, %v2460_v8  ;;  %v1931_v8 = vrot.slane %v68_v47, %v2487_v22 }
 0x453   :  { %v1782_v2 = vsel %vm425_vm0, %v1774_v61, 0.0 }
 0x454   :  { %v1783_v29 = vrot.slane %v1782_v2, 4  ;;  %v1775_v63 = vsel %vm425_vm0, %v1773_v24, 0.0  ;;  %v1906_v25 = vpop.f32.mrb[6].mxu1  ;;  %v1914_v43 = vrot.slane %v3026_v49, %v1913_v3 }
 0x455   :  { %v1776_v5 = vrot.slane %v1775_v63, 4  ;;  %v1907_v7 = vadd.f32 %v1906_v25, %v1836_v35  ;;  %v2176_v6 = vpop.f32.mrb[7].mxu1 }
 0x456   :  { %v1784_v21 = vadd.f32 %v1783_v29, %v1782_v2 }
 0x457   :  { %v1777_v27 = vadd.f32 %v1776_v5, %v1775_v63  ;;  %v1910_v15 = vmax.f32 %v1907_v7, 0.0 }
 0x458   :  { %v1785_v28 = vrot.slane %v1784_v21, 2 }
 0x459   :  { %v1778_v33 = vrot.slane %v1777_v27, 2  ;;  %v1921_v37 = vmul.f32 %v1920_v38, %v1910_v15 }
 0x45a   :  { %v1786_v60 = vadd.f32 %v1785_v28, %v1784_v21 }
 0x45b   :  { %v1779_v12 = vadd.f32 %v1778_v33, %v1777_v27  ;;  %v1923_v56 = vrot.slane %v1921_v37, 1 }
 0x45c   :  { %v1787_v34 = vrot.slane %v1786_v60, 1 }
 0x45d   :  { %v1780_v19 = vrot.slane %v1779_v12, 1 }
 0x45e   :  { %v1788_v48 = vadd.f32 %v1787_v34, %v1786_v60 }
 0x45f   :  { %v1781_v45 = vadd.f32 %v1780_v19, %v1779_v12 }
 0x460   :  { %v1819_v50 = vmul.f32 %v1816_v52, %v1788_v48 }
 0x461   :  { %v1818_v44 = vmul.f32 %v1811_v23, %v1781_v45 }
 0x462   :  { %v1916_v30 = vmul.f32 %v1914_v43, %v1819_v50 }
 0x463   :  { %v1915_v32 = vmul.f32 %v1914_v43, %v1818_v44 }
 0x464   :  { %v1927_v51 = vadd.f32 %v1923_v56, %v1916_v30 }
 0x465   :  { %v1926_v20 = vadd.f32 %v1921_v37, %v1915_v32 }
 0x466   :  { %v1933_v31 = vadd.f32 %v1931_v8, %v1927_v51 }
 0x467   :  { %v1932_v42 = vadd.f32 %v1931_v8, %v1926_v20 }
 0x468   :  { %v1936_v53 = vrot.slane %v1933_v31, 7 }
 0x46a   :  { %v1937_v49 = vsel %vm1489_vm2, %v1936_v53, %v1932_v42 }
 0x46b   :  { %v1940_v54 = vsel %vm1939_vm11, %v1937_v49, 0.0 }
 0x46c   :  { %1941 = vadd.xlane.f32.xlu1 %v1940_v54 }
 0x4f9   :  { %v1942_v57 = vpop.xlane.xlu1 %1941 }
 0x4fa   :  { %v1944_v59 = vsel %vm1943_vm12, %v1942_v57, 0.0 }
 0x4fb   :  { %1947 = vperm.xlu0 %2241, %v1944_v59  }
 0x57a   :  { %v1948_v1 = vpop.permute.xlu0 %1947 }
 0x57b   :  { %1950 = vst [vmem:[%s3076_s5] sm:$0xff] %v1948_v1 }
 0x57c   :  { %1955 = vsyncpa [#allocation3], 1 }

</bundles_post_ra>
